<compile_context>
chip_gen: v7x
topology: tpu7x:2x2x1
jax: 0.10.0
libtpu: 0.0.40
codegen_flags: <defaults>
</compile_context>

<pallas_src>
import jax
import jax.numpy as jnp
from jax import lax
from jax.experimental import pallas as pl
from jax.experimental.pallas import tpu as pltpu

# ---- small, module-consistent hyperparameters ------------------------------
INPUT_SIZE = 32          # (module default 5000; kept small for the demo)
HIDDEN = 32              # (module default 130)
LAYERS = 3
FC_SIZES = [64, 32, 16]
OP_SIZE = 1
EPS_LN = 1e-5
EPS_BN = 1e-5

B = 2                    # batch
T = 8                    # sequence length
BATCH_PAD = 8            # sublane-aligned working batch inside the kernel


# ---------------------------------------------------------------------------
# Pallas kernel: full forward pass (LSTM recurrence + MLP head)
# ---------------------------------------------------------------------------
def imdb_lstm_kernel(
    x_ref,                                   # (T*Bp, IN)  bf16, time-major, batch-padded
    w_ih0, w_hh0, b0,                        # layer 0: (IN,4H) bf16, (H,4H) f32, (1,4H) f32
    w_ih1, w_hh1, b1,                        # layer 1
    w_ih2, w_hh2, b2,                        # layer 2
    ln_g, ln_b,                              # LayerNorm gamma/beta   (1, H) f32
    fc0_w, fc0_b, bn0_s, bn0_o,              # Linear (in,out) bf16 + folded BN (eval) f32
    fc1_w, fc1_b, bn1_s, bn1_o,
    fc2_w, fc2_b, bn2_s, bn2_o,
    fco_w, fco_b,                            # output Linear (in, 1) bf16 + bias f32
    out_ref,                                 # (Bp, OP_SIZE) f32  (rows >= B are padding)
    xproj_ref,                               # scratch (T*Bp, 4H) f32
    seq_a_ref,                               # scratch (T*Bp, H) f32
    seq_b_ref,                               # scratch (T*Bp, H) f32
):
    H = HIDDEN
    Bp = out_ref.shape[0]
    TB = xproj_ref.shape[0]
    Tn = TB // Bp

    # Lane masks for the "g" gate (lanes [2H,3H)); hoisted out of all loops.
    # sigmoid(x) = 0.5*(1+tanh(x/2)) -> pre-scale non-g lanes by 0.5, one tanh
    # over the whole (Bp,4H) vreg, then affine-fix non-g lanes.
    lane = lax.broadcasted_iota(jnp.int32, (Bp, 4 * H), 1)
    is_g = jnp.logical_and(lane >= 2 * H, lane < 3 * H)
    g_scale = jnp.where(is_g, jnp.float32(1.0), jnp.float32(0.5))   # (Bp, 4H)
    g_shift = jnp.where(is_g, jnp.float32(0.0), jnp.float32(0.5))   # (Bp, 4H)

    def run_layer(in_seq_bf16, w_ih_ref, w_hh_ref, b_ref, out_slab_ref):
        # Batched x-projection over ALL timesteps at once (bf16 MXU, f32 accum),
        # bias folded in; written once to a VMEM slab so the recurrence reads
        # sublane-aligned (Bp, 4H) whole-tile slices per step.
        xproj_ref[...] = (
            jnp.dot(in_seq_bf16, w_ih_ref[...],
                    preferred_element_type=jnp.float32)
            + b_ref[...]
        )
        w_hh = w_hh_ref[...]                              # (H, 4H) f32, pre-transposed

        def step(t, carry):
            h, c = carry
            row = pl.multiple_of(t * Bp, Bp)
            gates = xproj_ref[pl.ds(row, Bp), :] + jnp.dot(
                h, w_hh, preferred_element_type=jnp.float32
            )                                             # (Bp, 4H)
            # Single EUP tanh pass for all four gates.
            th = jnp.tanh(gates * g_scale)
            act = th * g_scale + g_shift                  # i,f,o = sigmoid; g = tanh
            i_g = act[:, 0 * H:1 * H]
            f_g = act[:, 1 * H:2 * H]
            g_g = act[:, 2 * H:3 * H]
            o_g = act[:, 3 * H:4 * H]
            c = f_g * c + i_g * g_g
            h = o_g * jnp.tanh(c)
            # Tile-aligned slab write; feeds the next layer's batched x-projection.
            out_slab_ref[pl.ds(row, Bp), :] = h
            return h, c

        h0 = jnp.zeros((Bp, H), jnp.float32)
        c0 = jnp.zeros((Bp, H), jnp.float32)
        # TODO(synk): at production T (~200) use unroll=4..8 instead of full unroll.
        h, _ = lax.fori_loop(0, Tn, step, (h0, c0), unroll=True)
        return h

    # Layer 0 reads the (already bf16) padded time-major input; layers 1/2 read
    # the previous layer's hidden slab (stored f32, cast to bf16 at the dot).
    h = run_layer(x_ref[...], w_ih0, w_hh0, b0, seq_a_ref)
    h = run_layer(seq_a_ref[...].astype(jnp.bfloat16), w_ih1, w_hh1, b1, seq_b_ref)
    h = run_layer(seq_b_ref[...].astype(jnp.bfloat16), w_ih2, w_hh2, b2, seq_a_ref)

    h_last = h                                            # == lstm_out[:, -1, :] (padded rows junk)

    # ---- head: LayerNorm -> (Linear + BN(eval) + ReLU) x3 -> Linear --------
    # All ops are row-wise independent, so padded batch rows never contaminate
    # real rows; they are sliced off in the wrapper.
    x = h_last                                            # (Bp, H) f32
    mu = jnp.mean(x, axis=-1, keepdims=True)
    var = jnp.mean((x - mu) ** 2, axis=-1, keepdims=True)
    x = (x - mu) * lax.rsqrt(var + EPS_LN) * ln_g[...] + ln_b[...]

    for (w_ref, b_ref, s_ref, o_ref) in (
        (fc0_w, fc0_b, bn0_s, bn0_o),
        (fc1_w, fc1_b, bn1_s, bn1_o),
        (fc2_w, fc2_b, bn2_s, bn2_o),
    ):
        x = jnp.dot(x.astype(jnp.bfloat16), w_ref[...],
                    preferred_element_type=jnp.float32) + b_ref[...]
        x = x * s_ref[...] + o_ref[...]                   # BatchNorm1d (eval, folded)
        x = jnp.maximum(x, 0.0)                           # ReLU; Dropout(0.4) = id (eval)

    y = jnp.dot(x.astype(jnp.bfloat16), fco_w[...],
                preferred_element_type=jnp.float32) + fco_b[...]
    out_ref[...] = y.astype(out_ref.dtype)


# ---------------------------------------------------------------------------
# Parameter construction (deterministic, PyTorch-style init distributions)
# ---------------------------------------------------------------------------
def init_params(key):
    keys = iter(jax.random.split(key, 64))

    def u(shape, bound):
        return jax.random.uniform(next(keys), shape, jnp.float32, -bound, bound)

    # LSTM: all params ~ U(-1/sqrt(H), 1/sqrt(H)); fold b_ih + b_hh
    k_lstm = 1.0 / float(jnp.sqrt(jnp.float32(HIDDEN)))
    lstm = []
    for l in range(LAYERS):
        in_dim = INPUT_SIZE if l == 0 else HIDDEN
        w_ih = u((4 * HIDDEN, in_dim), k_lstm)            # PyTorch layout (4H, in)
        w_hh = u((4 * HIDDEN, HIDDEN), k_lstm)            # PyTorch layout (4H, H)
        b_ih = u((4 * HIDDEN,), k_lstm)
        b_hh = u((4 * HIDDEN,), k_lstm)
        lstm.append((w_ih, w_hh, (b_ih + b_hh).reshape(1, 4 * HIDDEN)))

    # LayerNorm
    ln_g = jnp.ones((1, HIDDEN), jnp.float32)
    ln_b = jnp.zeros((1, HIDDEN), jnp.float32)

    # Linear layers: U(-1/sqrt(fan_in), 1/sqrt(fan_in)), PyTorch layout (out, in)
    dims = [HIDDEN] + FC_SIZES + [OP_SIZE]
    fcs = []
    for i in range(len(dims) - 1):
        bound = 1.0 / float(jnp.sqrt(jnp.float32(dims[i])))
        w = u((dims[i + 1], dims[i]), bound)
        b = u((dims[i + 1],), bound).reshape(1, -1)
        fcs.append((w, b))

    # BatchNorm1d (eval): fold gamma/beta with running stats (init: mean=0, var=1)
    bn = []
    for sz in FC_SIZES:
        gamma = jnp.ones((sz,), jnp.float32)
        beta = jnp.zeros((sz,), jnp.float32)
        rmean = jnp.zeros((sz,), jnp.float32)
        rvar = jnp.ones((sz,), jnp.float32)
        scale = gamma / jnp.sqrt(rvar + EPS_BN)
        shift = beta - rmean * scale
        bn.append((scale.reshape(1, -1), shift.reshape(1, -1)))

    return lstm, (ln_g, ln_b), fcs, bn


def flatten_params(lstm, ln, fcs, bn):
    """Pre-transpose on the host (no in-kernel .T); bf16 for MXU-fed weights."""
    flat = []
    for (w_ih, w_hh, b) in lstm:
        flat += [jnp.asarray(w_ih.T).astype(jnp.bfloat16),   # (in, 4H) bf16
                 jnp.asarray(w_hh.T),                        # (H, 4H)  f32 (recurrence)
                 b]                                          # (1, 4H)  f32
    flat += [ln[0], ln[1]]
    for i in range(3):
        flat += [jnp.asarray(fcs[i][0].T).astype(jnp.bfloat16), fcs[i][1],
                 bn[i][0], bn[i][1]]
    flat += [jnp.asarray(fcs[3][0].T).astype(jnp.bfloat16), fcs[3][1]]
    return flat


# ---------------------------------------------------------------------------
# Wrapper around pallas_call
# ---------------------------------------------------------------------------
@jax.jit
def imdb_lstm_forward(x, flat_params):
    # x: (B, T, IN) batch_first, as in the PyTorch module.
    Bn, Tn, IN = x.shape
    Bp = BATCH_PAD
    # Pad batch to the sublane width (8) and go time-major: row = t*Bp + b.
    # Padded rows are zero; every per-timestep slice inside the kernel is then a
    # whole (8, lanes) tile. bf16 halves the x HBM->VMEM DMA.
    # TODO(synk): at production sizes do this reordering via a BlockSpec T-grid
    # instead of materializing a transposed copy in HBM.
    x_tm = jnp.transpose(x, (1, 0, 2))                       # (T, B, IN)
    x_tm = jnp.pad(x_tm, ((0, 0), (0, Bp - Bn), (0, 0)))     # (T, Bp, IN)
    x_tm = x_tm.reshape(Tn * Bp, IN).astype(jnp.bfloat16)

    args = [x_tm] + list(flat_params)
    out = pl.pallas_call(
        imdb_lstm_kernel,
        out_shape=jax.ShapeDtypeStruct((Bp, OP_SIZE), jnp.float32),
        in_specs=[pl.BlockSpec(memory_space=pltpu.MemorySpace.VMEM)] * len(args),
        out_specs=pl.BlockSpec(memory_space=pltpu.MemorySpace.VMEM),
        scratch_shapes=[
            pltpu.VMEM((Tn * Bp, 4 * HIDDEN), jnp.float32),  # xproj slab
            pltpu.VMEM((Tn * Bp, HIDDEN), jnp.float32),      # hidden-seq slab A
            pltpu.VMEM((Tn * Bp, HIDDEN), jnp.float32),      # hidden-seq slab B
        ],
        compiler_params=pltpu.CompilerParams(
            vmem_limit_bytes=32 * 1024 * 1024,
        ),
    )(*args)
    return out[:Bn]                                          # drop padded batch rows


# ---------------------------------------------------------------------------
# Pure-JAX reference (for correctness); mirrors the kernel's bf16 MXU operands.
# ---------------------------------------------------------------------------
def reference_forward(x, lstm, ln, fcs, bn):
    h_seq = x
    for (w_ih, w_hh, b) in lstm:
        w_ih_t = jnp.asarray(w_ih.T).astype(jnp.bfloat16)
        w_hh_t = jnp.asarray(w_hh.T)
        xin = h_seq.astype(jnp.bfloat16)
        h = jnp.zeros((x.shape[0], HIDDEN), jnp.float32)
        c = jnp.zeros((x.shape[0], HIDDEN), jnp.float32)
        outs = []
        for t in range(x.shape[1]):
            g = (jnp.dot(xin[:, t, :], w_ih_t, preferred_element_type=jnp.float32)
                 + jnp.dot(h, w_hh_t, preferred_element_type=jnp.float32) + b)
            i_g = jax.nn.sigmoid(g[:, :HIDDEN])
            f_g = jax.nn.sigmoid(g[:, HIDDEN:2 * HIDDEN])
            g_g = jnp.tanh(g[:, 2 * HIDDEN:3 * HIDDEN])
            o_g = jax.nn.sigmoid(g[:, 3 * HIDDEN:])
            c = f_g * c + i_g * g_g
            h = o_g * jnp.tanh(c)
            outs.append(h)
        h_seq = jnp.stack(outs, axis=1)
    z = h_seq[:, -1, :]
    mu = z.mean(-1, keepdims=True)
    var = ((z - mu) ** 2).mean(-1, keepdims=True)
    z = (z - mu) / jnp.sqrt(var + EPS_LN) * ln[0] + ln[1]
    for i in range(3):
        w_t = jnp.asarray(fcs[i][0].T).astype(jnp.bfloat16)
        z = jnp.dot(z.astype(jnp.bfloat16), w_t,
                    preferred_element_type=jnp.float32) + fcs[i][1]
        z = jnp.maximum(z * bn[i][0] + bn[i][1], 0.0)
    w_t = jnp.asarray(fcs[3][0].T).astype(jnp.bfloat16)
    return jnp.dot(z.astype(jnp.bfloat16), w_t,
                   preferred_element_type=jnp.float32) + fcs[3][1]


if __name__ == "__main__":
    key = jax.random.PRNGKey(0)
    k_x, k_p = jax.random.split(key)

    x = jax.random.normal(k_x, (B, T, INPUT_SIZE), jnp.float32)
    lstm, ln, fcs, bn = init_params(k_p)
    flat = flatten_params(lstm, ln, fcs, bn)

    out = imdb_lstm_forward(x, flat)
    out = jax.block_until_ready(out)

    ref = reference_forward(x, lstm, ln, fcs, bn)
    assert out.shape == (B, OP_SIZE)
    assert jnp.allclose(out, ref, atol=2e-3, rtol=2e-3), (out, ref)

    print("KERNEL_OK")
</pallas_src>

<mosaic_0001>
module attributes {stable_mosaic.version = 11 : i64} {
  func.func @imdb_lstm_kernel(%arg0: memref<64x32xbf16, #tpu.memory_space<vmem>>, %arg1: memref<32x128xbf16, #tpu.memory_space<vmem>>, %arg2: memref<32x128xf32, #tpu.memory_space<vmem>>, %arg3: memref<1x128xf32, #tpu.memory_space<vmem>>, %arg4: memref<32x128xbf16, #tpu.memory_space<vmem>>, %arg5: memref<32x128xf32, #tpu.memory_space<vmem>>, %arg6: memref<1x128xf32, #tpu.memory_space<vmem>>, %arg7: memref<32x128xbf16, #tpu.memory_space<vmem>>, %arg8: memref<32x128xf32, #tpu.memory_space<vmem>>, %arg9: memref<1x128xf32, #tpu.memory_space<vmem>>, %arg10: memref<1x32xf32, #tpu.memory_space<vmem>>, %arg11: memref<1x32xf32, #tpu.memory_space<vmem>>, %arg12: memref<32x64xbf16, #tpu.memory_space<vmem>>, %arg13: memref<1x64xf32, #tpu.memory_space<vmem>>, %arg14: memref<1x64xf32, #tpu.memory_space<vmem>>, %arg15: memref<1x64xf32, #tpu.memory_space<vmem>>, %arg16: memref<64x32xbf16, #tpu.memory_space<vmem>>, %arg17: memref<1x32xf32, #tpu.memory_space<vmem>>, %arg18: memref<1x32xf32, #tpu.memory_space<vmem>>, %arg19: memref<1x32xf32, #tpu.memory_space<vmem>>, %arg20: memref<32x16xbf16, #tpu.memory_space<vmem>>, %arg21: memref<1x16xf32, #tpu.memory_space<vmem>>, %arg22: memref<1x16xf32, #tpu.memory_space<vmem>>, %arg23: memref<1x16xf32, #tpu.memory_space<vmem>>, %arg24: memref<16x1xbf16, #tpu.memory_space<vmem>>, %arg25: memref<1x1xf32, #tpu.memory_space<vmem>>, %arg26: memref<8x1xf32, #tpu.memory_space<vmem>>, %arg27: memref<64x128xf32, #tpu.memory_space<vmem>>, %arg28: memref<64x32xf32, #tpu.memory_space<vmem>>, %arg29: memref<64x32xf32, #tpu.memory_space<vmem>>) attributes {dimension_semantics = [], scalar_prefetch = 0 : i64, scratch_operands = 3 : i64, tpu.core_type = #tpu.core_type<tc>} {
    %0 = tpu.iota {dimensions = array<i32: 1>} : vector<8x128xi32>
    %c64_i32 = arith.constant 64 : i32
    %1 = vector.broadcast %c64_i32 : i32 to vector<8x128xi32>
    %2 = arith.cmpi sge, %0, %1 : vector<8x128xi32>
    %c96_i32 = arith.constant 96 : i32
    %3 = vector.broadcast %c96_i32 : i32 to vector<8x128xi32>
    %4 = arith.cmpi slt, %0, %3 : vector<8x128xi32>
    %5 = arith.andi %2, %4 : vector<8x128xi1>
    %cst = arith.constant 1.000000e+00 : f32
    %cst_0 = arith.constant 5.000000e-01 : f32
    %6 = vector.broadcast %cst : f32 to vector<8x128xf32>
    %7 = vector.broadcast %cst_0 : f32 to vector<8x128xf32>
    %8 = arith.select %5, %6, %7 : vector<8x128xi1>, vector<8x128xf32>
    %cst_1 = arith.constant 0.000000e+00 : f32
    %cst_2 = arith.constant 5.000000e-01 : f32
    %9 = vector.broadcast %cst_1 : f32 to vector<8x128xf32>
    %10 = vector.broadcast %cst_2 : f32 to vector<8x128xf32>
    %11 = arith.select %5, %9, %10 : vector<8x128xi1>, vector<8x128xf32>
    %c0 = arith.constant 0 : index
    %c0_3 = arith.constant 0 : index
    %12 = vector.load %arg0[%c0, %c0_3] : memref<64x32xbf16, #tpu.memory_space<vmem>>, vector<64x32xbf16>
    %c0_4 = arith.constant 0 : index
    %c0_5 = arith.constant 0 : index
    %13 = vector.load %arg1[%c0_4, %c0_5] : memref<32x128xbf16, #tpu.memory_space<vmem>>, vector<32x128xbf16>
    %cst_6 = arith.constant dense<0.000000e+00> : vector<64x128xf32>
    %14 = tpu.matmul %12, %13, %cst_6 {dimension_numbers = #tpu.dot_dimension_numbers<[1], [0], [0], [1], [0, 0, 1, 1], [], []>} : vector<64x32xbf16>, vector<32x128xbf16>, vector<64x128xf32> -> vector<64x128xf32>
    %c0_7 = arith.constant 0 : index
    %c0_8 = arith.constant 0 : index
    %15 = vector.load %arg3[%c0_7, %c0_8] : memref<1x128xf32, #tpu.memory_space<vmem>>, vector<1x128xf32>
    %16 = vector.broadcast %15 : vector<1x128xf32> to vector<64x128xf32>
    %17 = arith.addf %14, %16 : vector<64x128xf32>
    %c0_9 = arith.constant 0 : index
    %c0_10 = arith.constant 0 : index
    %18 = vector.load %arg27[%c0_9, %c0_10] : memref<64x128xf32, #tpu.memory_space<vmem>>, vector<64x128xf32>
    tpu.vector_store %arg27[%c0_9, %c0_10], %17 {strides = array<i32>} : memref<64x128xf32, #tpu.memory_space<vmem>>, vector<64x128xf32>,
    %c0_11 = arith.constant 0 : index
    %c0_12 = arith.constant 0 : index
    %19 = vector.load %arg2[%c0_11, %c0_12] : memref<32x128xf32, #tpu.memory_space<vmem>>, vector<32x128xf32>
    %cst_13 = arith.constant 0.000000e+00 : f32
    %20 = vector.broadcast %cst_13 : f32 to vector<8x32xf32>
    %cst_14 = arith.constant 0.000000e+00 : f32
    %21 = vector.broadcast %cst_14 : f32 to vector<8x32xf32>
    %c0_i32 = arith.constant 0 : i32
    %c8_i32 = arith.constant 8 : i32
    %22 = arith.muli %c0_i32, %c8_i32 : i32
    %23 = tpu.assume_multiple %22, 8 : i32
    %24 = arith.index_cast %23 : i32 to index
    %c0_15 = arith.constant 0 : index
    %25 = vector.load %arg27[%24, %c0_15] : memref<64x128xf32, #tpu.memory_space<vmem>>, vector<8x128xf32>
    %cst_16 = arith.constant dense<0.000000e+00> : vector<8x128xf32>
    %26 = tpu.matmul %20, %19, %cst_16 {dimension_numbers = #tpu.dot_dimension_numbers<[1], [0], [0], [1], [0, 0, 1, 1], [], []>} : vector<8x32xf32>, vector<32x128xf32>, vector<8x128xf32> -> vector<8x128xf32>
    %27 = arith.addf %25, %26 : vector<8x128xf32>
    %28 = arith.mulf %27, %8 : vector<8x128xf32>
    %29 = math.tanh %28 : vector<8x128xf32>
    %30 = arith.mulf %29, %8 : vector<8x128xf32>
    %31 = arith.addf %30, %11 : vector<8x128xf32>
    %32 = vector.extract_strided_slice %31 {offsets = [0, 0], sizes = [8, 32], strides = [1, 1]} : vector<8x128xf32> to vector<8x32xf32>
    %33 = vector.extract_strided_slice %31 {offsets = [0, 32], sizes = [8, 32], strides = [1, 1]} : vector<8x128xf32> to vector<8x32xf32>
    %34 = vector.extract_strided_slice %31 {offsets = [0, 64], sizes = [8, 32], strides = [1, 1]} : vector<8x128xf32> to vector<8x32xf32>
    %35 = vector.extract_strided_slice %31 {offsets = [0, 96], sizes = [8, 32], strides = [1, 1]} : vector<8x128xf32> to vector<8x32xf32>
    %36 = arith.mulf %33, %21 : vector<8x32xf32>
    %37 = arith.mulf %32, %34 : vector<8x32xf32>
    %38 = arith.addf %36, %37 : vector<8x32xf32>
    %39 = math.tanh %38 : vector<8x32xf32>
    %40 = arith.mulf %35, %39 : vector<8x32xf32>
    %41 = arith.index_cast %23 : i32 to index
    %c0_17 = arith.constant 0 : index
    %42 = vector.load %arg28[%41, %c0_17] : memref<64x32xf32, #tpu.memory_space<vmem>>, vector<8x32xf32>
    tpu.vector_store %arg28[%41, %c0_17], %40 {strides = array<i32>} : memref<64x32xf32, #tpu.memory_space<vmem>>, vector<8x32xf32>,
    %c1_i32 = arith.constant 1 : i32
    %c8_i32_18 = arith.constant 8 : i32
    %43 = arith.muli %c1_i32, %c8_i32_18 : i32
    %44 = tpu.assume_multiple %43, 8 : i32
    %45 = arith.index_cast %44 : i32 to index
    %c0_19 = arith.constant 0 : index
    %46 = vector.load %arg27[%45, %c0_19] : memref<64x128xf32, #tpu.memory_space<vmem>>, vector<8x128xf32>
    %cst_20 = arith.constant dense<0.000000e+00> : vector<8x128xf32>
    %47 = tpu.matmul %40, %19, %cst_20 {dimension_numbers = #tpu.dot_dimension_numbers<[1], [0], [0], [1], [0, 0, 1, 1], [], []>} : vector<8x32xf32>, vector<32x128xf32>, vector<8x128xf32> -> vector<8x128xf32>
    %48 = arith.addf %46, %47 : vector<8x128xf32>
    %49 = arith.mulf %48, %8 : vector<8x128xf32>
    %50 = math.tanh %49 : vector<8x128xf32>
    %51 = arith.mulf %50, %8 : vector<8x128xf32>
    %52 = arith.addf %51, %11 : vector<8x128xf32>
    %53 = vector.extract_strided_slice %52 {offsets = [0, 0], sizes = [8, 32], strides = [1, 1]} : vector<8x128xf32> to vector<8x32xf32>
    %54 = vector.extract_strided_slice %52 {offsets = [0, 32], sizes = [8, 32], strides = [1, 1]} : vector<8x128xf32> to vector<8x32xf32>
    %55 = vector.extract_strided_slice %52 {offsets = [0, 64], sizes = [8, 32], strides = [1, 1]} : vector<8x128xf32> to vector<8x32xf32>
    %56 = vector.extract_strided_slice %52 {offsets = [0, 96], sizes = [8, 32], strides = [1, 1]} : vector<8x128xf32> to vector<8x32xf32>
    %57 = arith.mulf %54, %38 : vector<8x32xf32>
    %58 = arith.mulf %53, %55 : vector<8x32xf32>
    %59 = arith.addf %57, %58 : vector<8x32xf32>
    %60 = math.tanh %59 : vector<8x32xf32>
    %61 = arith.mulf %56, %60 : vector<8x32xf32>
    %62 = arith.index_cast %44 : i32 to index
    %c0_21 = arith.constant 0 : index
    %63 = vector.load %arg28[%62, %c0_21] : memref<64x32xf32, #tpu.memory_space<vmem>>, vector<8x32xf32>
    tpu.vector_store %arg28[%62, %c0_21], %61 {strides = array<i32>} : memref<64x32xf32, #tpu.memory_space<vmem>>, vector<8x32xf32>,
    %c2_i32 = arith.constant 2 : i32
    %c8_i32_22 = arith.constant 8 : i32
    %64 = arith.muli %c2_i32, %c8_i32_22 : i32
    %65 = tpu.assume_multiple %64, 8 : i32
    %66 = arith.index_cast %65 : i32 to index
    %c0_23 = arith.constant 0 : index
    %67 = vector.load %arg27[%66, %c0_23] : memref<64x128xf32, #tpu.memory_space<vmem>>, vector<8x128xf32>
    %cst_24 = arith.constant dense<0.000000e+00> : vector<8x128xf32>
    %68 = tpu.matmul %61, %19, %cst_24 {dimension_numbers = #tpu.dot_dimension_numbers<[1], [0], [0], [1], [0, 0, 1, 1], [], []>} : vector<8x32xf32>, vector<32x128xf32>, vector<8x128xf32> -> vector<8x128xf32>
    %69 = arith.addf %67, %68 : vector<8x128xf32>
    %70 = arith.mulf %69, %8 : vector<8x128xf32>
    %71 = math.tanh %70 : vector<8x128xf32>
    %72 = arith.mulf %71, %8 : vector<8x128xf32>
    %73 = arith.addf %72, %11 : vector<8x128xf32>
    %74 = vector.extract_strided_slice %73 {offsets = [0, 0], sizes = [8, 32], strides = [1, 1]} : vector<8x128xf32> to vector<8x32xf32>
    %75 = vector.extract_strided_slice %73 {offsets = [0, 32], sizes = [8, 32], strides = [1, 1]} : vector<8x128xf32> to vector<8x32xf32>
    %76 = vector.extract_strided_slice %73 {offsets = [0, 64], sizes = [8, 32], strides = [1, 1]} : vector<8x128xf32> to vector<8x32xf32>
    %77 = vector.extract_strided_slice %73 {offsets = [0, 96], sizes = [8, 32], strides = [1, 1]} : vector<8x128xf32> to vector<8x32xf32>
    %78 = arith.mulf %75, %59 : vector<8x32xf32>
    %79 = arith.mulf %74, %76 : vector<8x32xf32>
    %80 = arith.addf %78, %79 : vector<8x32xf32>
    %81 = math.tanh %80 : vector<8x32xf32>
    %82 = arith.mulf %77, %81 : vector<8x32xf32>
    %83 = arith.index_cast %65 : i32 to index
    %c0_25 = arith.constant 0 : index
    %84 = vector.load %arg28[%83, %c0_25] : memref<64x32xf32, #tpu.memory_space<vmem>>, vector<8x32xf32>
    tpu.vector_store %arg28[%83, %c0_25], %82 {strides = array<i32>} : memref<64x32xf32, #tpu.memory_space<vmem>>, vector<8x32xf32>,
    %c3_i32 = arith.constant 3 : i32
    %c8_i32_26 = arith.constant 8 : i32
    %85 = arith.muli %c3_i32, %c8_i32_26 : i32
    %86 = tpu.assume_multiple %85, 8 : i32
    %87 = arith.index_cast %86 : i32 to index
    %c0_27 = arith.constant 0 : index
    %88 = vector.load %arg27[%87, %c0_27] : memref<64x128xf32, #tpu.memory_space<vmem>>, vector<8x128xf32>
    %cst_28 = arith.constant dense<0.000000e+00> : vector<8x128xf32>
    %89 = tpu.matmul %82, %19, %cst_28 {dimension_numbers = #tpu.dot_dimension_numbers<[1], [0], [0], [1], [0, 0, 1, 1], [], []>} : vector<8x32xf32>, vector<32x128xf32>, vector<8x128xf32> -> vector<8x128xf32>
    %90 = arith.addf %88, %89 : vector<8x128xf32>
    %91 = arith.mulf %90, %8 : vector<8x128xf32>
    %92 = math.tanh %91 : vector<8x128xf32>
    %93 = arith.mulf %92, %8 : vector<8x128xf32>
    %94 = arith.addf %93, %11 : vector<8x128xf32>
    %95 = vector.extract_strided_slice %94 {offsets = [0, 0], sizes = [8, 32], strides = [1, 1]} : vector<8x128xf32> to vector<8x32xf32>
    %96 = vector.extract_strided_slice %94 {offsets = [0, 32], sizes = [8, 32], strides = [1, 1]} : vector<8x128xf32> to vector<8x32xf32>
    %97 = vector.extract_strided_slice %94 {offsets = [0, 64], sizes = [8, 32], strides = [1, 1]} : vector<8x128xf32> to vector<8x32xf32>
    %98 = vector.extract_strided_slice %94 {offsets = [0, 96], sizes = [8, 32], strides = [1, 1]} : vector<8x128xf32> to vector<8x32xf32>
    %99 = arith.mulf %96, %80 : vector<8x32xf32>
    %100 = arith.mulf %95, %97 : vector<8x32xf32>
    %101 = arith.addf %99, %100 : vector<8x32xf32>
    %102 = math.tanh %101 : vector<8x32xf32>
    %103 = arith.mulf %98, %102 : vector<8x32xf32>
    %104 = arith.index_cast %86 : i32 to index
    %c0_29 = arith.constant 0 : index
    %105 = vector.load %arg28[%104, %c0_29] : memref<64x32xf32, #tpu.memory_space<vmem>>, vector<8x32xf32>
    tpu.vector_store %arg28[%104, %c0_29], %103 {strides = array<i32>} : memref<64x32xf32, #tpu.memory_space<vmem>>, vector<8x32xf32>,
    %c4_i32 = arith.constant 4 : i32
    %c8_i32_30 = arith.constant 8 : i32
    %106 = arith.muli %c4_i32, %c8_i32_30 : i32
    %107 = tpu.assume_multiple %106, 8 : i32
    %108 = arith.index_cast %107 : i32 to index
    %c0_31 = arith.constant 0 : index
    %109 = vector.load %arg27[%108, %c0_31] : memref<64x128xf32, #tpu.memory_space<vmem>>, vector<8x128xf32>
    %cst_32 = arith.constant dense<0.000000e+00> : vector<8x128xf32>
    %110 = tpu.matmul %103, %19, %cst_32 {dimension_numbers = #tpu.dot_dimension_numbers<[1], [0], [0], [1], [0, 0, 1, 1], [], []>} : vector<8x32xf32>, vector<32x128xf32>, vector<8x128xf32> -> vector<8x128xf32>
    %111 = arith.addf %109, %110 : vector<8x128xf32>
    %112 = arith.mulf %111, %8 : vector<8x128xf32>
    %113 = math.tanh %112 : vector<8x128xf32>
    %114 = arith.mulf %113, %8 : vector<8x128xf32>
    %115 = arith.addf %114, %11 : vector<8x128xf32>
    %116 = vector.extract_strided_slice %115 {offsets = [0, 0], sizes = [8, 32], strides = [1, 1]} : vector<8x128xf32> to vector<8x32xf32>
    %117 = vector.extract_strided_slice %115 {offsets = [0, 32], sizes = [8, 32], strides = [1, 1]} : vector<8x128xf32> to vector<8x32xf32>
    %118 = vector.extract_strided_slice %115 {offsets = [0, 64], sizes = [8, 32], strides = [1, 1]} : vector<8x128xf32> to vector<8x32xf32>
    %119 = vector.extract_strided_slice %115 {offsets = [0, 96], sizes = [8, 32], strides = [1, 1]} : vector<8x128xf32> to vector<8x32xf32>
    %120 = arith.mulf %117, %101 : vector<8x32xf32>
    %121 = arith.mulf %116, %118 : vector<8x32xf32>
    %122 = arith.addf %120, %121 : vector<8x32xf32>
    %123 = math.tanh %122 : vector<8x32xf32>
    %124 = arith.mulf %119, %123 : vector<8x32xf32>
    %125 = arith.index_cast %107 : i32 to index
    %c0_33 = arith.constant 0 : index
    %126 = vector.load %arg28[%125, %c0_33] : memref<64x32xf32, #tpu.memory_space<vmem>>, vector<8x32xf32>
    tpu.vector_store %arg28[%125, %c0_33], %124 {strides = array<i32>} : memref<64x32xf32, #tpu.memory_space<vmem>>, vector<8x32xf32>,
    %c5_i32 = arith.constant 5 : i32
    %c8_i32_34 = arith.constant 8 : i32
    %127 = arith.muli %c5_i32, %c8_i32_34 : i32
    %128 = tpu.assume_multiple %127, 8 : i32
    %129 = arith.index_cast %128 : i32 to index
    %c0_35 = arith.constant 0 : index
    %130 = vector.load %arg27[%129, %c0_35] : memref<64x128xf32, #tpu.memory_space<vmem>>, vector<8x128xf32>
    %cst_36 = arith.constant dense<0.000000e+00> : vector<8x128xf32>
    %131 = tpu.matmul %124, %19, %cst_36 {dimension_numbers = #tpu.dot_dimension_numbers<[1], [0], [0], [1], [0, 0, 1, 1], [], []>} : vector<8x32xf32>, vector<32x128xf32>, vector<8x128xf32> -> vector<8x128xf32>
    %132 = arith.addf %130, %131 : vector<8x128xf32>
    %133 = arith.mulf %132, %8 : vector<8x128xf32>
    %134 = math.tanh %133 : vector<8x128xf32>
    %135 = arith.mulf %134, %8 : vector<8x128xf32>
    %136 = arith.addf %135, %11 : vector<8x128xf32>
    %137 = vector.extract_strided_slice %136 {offsets = [0, 0], sizes = [8, 32], strides = [1, 1]} : vector<8x128xf32> to vector<8x32xf32>
    %138 = vector.extract_strided_slice %136 {offsets = [0, 32], sizes = [8, 32], strides = [1, 1]} : vector<8x128xf32> to vector<8x32xf32>
    %139 = vector.extract_strided_slice %136 {offsets = [0, 64], sizes = [8, 32], strides = [1, 1]} : vector<8x128xf32> to vector<8x32xf32>
    %140 = vector.extract_strided_slice %136 {offsets = [0, 96], sizes = [8, 32], strides = [1, 1]} : vector<8x128xf32> to vector<8x32xf32>
    %141 = arith.mulf %138, %122 : vector<8x32xf32>
    %142 = arith.mulf %137, %139 : vector<8x32xf32>
    %143 = arith.addf %141, %142 : vector<8x32xf32>
    %144 = math.tanh %143 : vector<8x32xf32>
    %145 = arith.mulf %140, %144 : vector<8x32xf32>
    %146 = arith.index_cast %128 : i32 to index
    %c0_37 = arith.constant 0 : index
    %147 = vector.load %arg28[%146, %c0_37] : memref<64x32xf32, #tpu.memory_space<vmem>>, vector<8x32xf32>
    tpu.vector_store %arg28[%146, %c0_37], %145 {strides = array<i32>} : memref<64x32xf32, #tpu.memory_space<vmem>>, vector<8x32xf32>,
    %c6_i32 = arith.constant 6 : i32
    %c8_i32_38 = arith.constant 8 : i32
    %148 = arith.muli %c6_i32, %c8_i32_38 : i32
    %149 = tpu.assume_multiple %148, 8 : i32
    %150 = arith.index_cast %149 : i32 to index
    %c0_39 = arith.constant 0 : index
    %151 = vector.load %arg27[%150, %c0_39] : memref<64x128xf32, #tpu.memory_space<vmem>>, vector<8x128xf32>
    %cst_40 = arith.constant dense<0.000000e+00> : vector<8x128xf32>
    %152 = tpu.matmul %145, %19, %cst_40 {dimension_numbers = #tpu.dot_dimension_numbers<[1], [0], [0], [1], [0, 0, 1, 1], [], []>} : vector<8x32xf32>, vector<32x128xf32>, vector<8x128xf32> -> vector<8x128xf32>
    %153 = arith.addf %151, %152 : vector<8x128xf32>
    %154 = arith.mulf %153, %8 : vector<8x128xf32>
    %155 = math.tanh %154 : vector<8x128xf32>
    %156 = arith.mulf %155, %8 : vector<8x128xf32>
    %157 = arith.addf %156, %11 : vector<8x128xf32>
    %158 = vector.extract_strided_slice %157 {offsets = [0, 0], sizes = [8, 32], strides = [1, 1]} : vector<8x128xf32> to vector<8x32xf32>
    %159 = vector.extract_strided_slice %157 {offsets = [0, 32], sizes = [8, 32], strides = [1, 1]} : vector<8x128xf32> to vector<8x32xf32>
    %160 = vector.extract_strided_slice %157 {offsets = [0, 64], sizes = [8, 32], strides = [1, 1]} : vector<8x128xf32> to vector<8x32xf32>
    %161 = vector.extract_strided_slice %157 {offsets = [0, 96], sizes = [8, 32], strides = [1, 1]} : vector<8x128xf32> to vector<8x32xf32>
    %162 = arith.mulf %159, %143 : vector<8x32xf32>
    %163 = arith.mulf %158, %160 : vector<8x32xf32>
    %164 = arith.addf %162, %163 : vector<8x32xf32>
    %165 = math.tanh %164 : vector<8x32xf32>
    %166 = arith.mulf %161, %165 : vector<8x32xf32>
    %167 = arith.index_cast %149 : i32 to index
    %c0_41 = arith.constant 0 : index
    %168 = vector.load %arg28[%167, %c0_41] : memref<64x32xf32, #tpu.memory_space<vmem>>, vector<8x32xf32>
    tpu.vector_store %arg28[%167, %c0_41], %166 {strides = array<i32>} : memref<64x32xf32, #tpu.memory_space<vmem>>, vector<8x32xf32>,
    %c7_i32 = arith.constant 7 : i32
    %c8_i32_42 = arith.constant 8 : i32
    %169 = arith.muli %c7_i32, %c8_i32_42 : i32
    %170 = tpu.assume_multiple %169, 8 : i32
    %171 = arith.index_cast %170 : i32 to index
    %c0_43 = arith.constant 0 : index
    %172 = vector.load %arg27[%171, %c0_43] : memref<64x128xf32, #tpu.memory_space<vmem>>, vector<8x128xf32>
    %cst_44 = arith.constant dense<0.000000e+00> : vector<8x128xf32>
    %173 = tpu.matmul %166, %19, %cst_44 {dimension_numbers = #tpu.dot_dimension_numbers<[1], [0], [0], [1], [0, 0, 1, 1], [], []>} : vector<8x32xf32>, vector<32x128xf32>, vector<8x128xf32> -> vector<8x128xf32>
    %174 = arith.addf %172, %173 : vector<8x128xf32>
    %175 = arith.mulf %174, %8 : vector<8x128xf32>
    %176 = math.tanh %175 : vector<8x128xf32>
    %177 = arith.mulf %176, %8 : vector<8x128xf32>
    %178 = arith.addf %177, %11 : vector<8x128xf32>
    %179 = vector.extract_strided_slice %178 {offsets = [0, 0], sizes = [8, 32], strides = [1, 1]} : vector<8x128xf32> to vector<8x32xf32>
    %180 = vector.extract_strided_slice %178 {offsets = [0, 32], sizes = [8, 32], strides = [1, 1]} : vector<8x128xf32> to vector<8x32xf32>
    %181 = vector.extract_strided_slice %178 {offsets = [0, 64], sizes = [8, 32], strides = [1, 1]} : vector<8x128xf32> to vector<8x32xf32>
    %182 = vector.extract_strided_slice %178 {offsets = [0, 96], sizes = [8, 32], strides = [1, 1]} : vector<8x128xf32> to vector<8x32xf32>
    %183 = arith.mulf %180, %164 : vector<8x32xf32>
    %184 = arith.mulf %179, %181 : vector<8x32xf32>
    %185 = arith.addf %183, %184 : vector<8x32xf32>
    %186 = math.tanh %185 : vector<8x32xf32>
    %187 = arith.mulf %182, %186 : vector<8x32xf32>
    %188 = arith.index_cast %170 : i32 to index
    %c0_45 = arith.constant 0 : index
    %189 = vector.load %arg28[%188, %c0_45] : memref<64x32xf32, #tpu.memory_space<vmem>>, vector<8x32xf32>
    tpu.vector_store %arg28[%188, %c0_45], %187 {strides = array<i32>} : memref<64x32xf32, #tpu.memory_space<vmem>>, vector<8x32xf32>,
    %c8_i32_46 = arith.constant 8 : i32
    %c0_47 = arith.constant 0 : index
    %c0_48 = arith.constant 0 : index
    %190 = vector.load %arg28[%c0_47, %c0_48] : memref<64x32xf32, #tpu.memory_space<vmem>>, vector<64x32xf32>
    %191 = arith.truncf %190 : vector<64x32xf32> to vector<64x32xbf16>
    %c0_49 = arith.constant 0 : index
    %c0_50 = arith.constant 0 : index
    %192 = vector.load %arg4[%c0_49, %c0_50] : memref<32x128xbf16, #tpu.memory_space<vmem>>, vector<32x128xbf16>
    %cst_51 = arith.constant dense<0.000000e+00> : vector<64x128xf32>
    %193 = tpu.matmul %191, %192, %cst_51 {dimension_numbers = #tpu.dot_dimension_numbers<[1], [0], [0], [1], [0, 0, 1, 1], [], []>} : vector<64x32xbf16>, vector<32x128xbf16>, vector<64x128xf32> -> vector<64x128xf32>
    %c0_52 = arith.constant 0 : index
    %c0_53 = arith.constant 0 : index
    %194 = vector.load %arg6[%c0_52, %c0_53] : memref<1x128xf32, #tpu.memory_space<vmem>>, vector<1x128xf32>
    %195 = vector.broadcast %194 : vector<1x128xf32> to vector<64x128xf32>
    %196 = arith.addf %193, %195 : vector<64x128xf32>
    %c0_54 = arith.constant 0 : index
    %c0_55 = arith.constant 0 : index
    %197 = vector.load %arg27[%c0_54, %c0_55] : memref<64x128xf32, #tpu.memory_space<vmem>>, vector<64x128xf32>
    tpu.vector_store %arg27[%c0_54, %c0_55], %196 {strides = array<i32>} : memref<64x128xf32, #tpu.memory_space<vmem>>, vector<64x128xf32>,
    %c0_56 = arith.constant 0 : index
    %c0_57 = arith.constant 0 : index
    %198 = vector.load %arg5[%c0_56, %c0_57] : memref<32x128xf32, #tpu.memory_space<vmem>>, vector<32x128xf32>
    %cst_58 = arith.constant 0.000000e+00 : f32
    %199 = vector.broadcast %cst_58 : f32 to vector<8x32xf32>
    %cst_59 = arith.constant 0.000000e+00 : f32
    %200 = vector.broadcast %cst_59 : f32 to vector<8x32xf32>
    %c0_i32_60 = arith.constant 0 : i32
    %c8_i32_61 = arith.constant 8 : i32
    %201 = arith.muli %c0_i32_60, %c8_i32_61 : i32
    %202 = tpu.assume_multiple %201, 8 : i32
    %203 = arith.index_cast %202 : i32 to index
    %c0_62 = arith.constant 0 : index
    %204 = vector.load %arg27[%203, %c0_62] : memref<64x128xf32, #tpu.memory_space<vmem>>, vector<8x128xf32>
    %cst_63 = arith.constant dense<0.000000e+00> : vector<8x128xf32>
    %205 = tpu.matmul %199, %198, %cst_63 {dimension_numbers = #tpu.dot_dimension_numbers<[1], [0], [0], [1], [0, 0, 1, 1], [], []>} : vector<8x32xf32>, vector<32x128xf32>, vector<8x128xf32> -> vector<8x128xf32>
    %206 = arith.addf %204, %205 : vector<8x128xf32>
    %207 = arith.mulf %206, %8 : vector<8x128xf32>
    %208 = math.tanh %207 : vector<8x128xf32>
    %209 = arith.mulf %208, %8 : vector<8x128xf32>
    %210 = arith.addf %209, %11 : vector<8x128xf32>
    %211 = vector.extract_strided_slice %210 {offsets = [0, 0], sizes = [8, 32], strides = [1, 1]} : vector<8x128xf32> to vector<8x32xf32>
    %212 = vector.extract_strided_slice %210 {offsets = [0, 32], sizes = [8, 32], strides = [1, 1]} : vector<8x128xf32> to vector<8x32xf32>
    %213 = vector.extract_strided_slice %210 {offsets = [0, 64], sizes = [8, 32], strides = [1, 1]} : vector<8x128xf32> to vector<8x32xf32>
    %214 = vector.extract_strided_slice %210 {offsets = [0, 96], sizes = [8, 32], strides = [1, 1]} : vector<8x128xf32> to vector<8x32xf32>
    %215 = arith.mulf %212, %200 : vector<8x32xf32>
    %216 = arith.mulf %211, %213 : vector<8x32xf32>
    %217 = arith.addf %215, %216 : vector<8x32xf32>
    %218 = math.tanh %217 : vector<8x32xf32>
    %219 = arith.mulf %214, %218 : vector<8x32xf32>
    %220 = arith.index_cast %202 : i32 to index
    %c0_64 = arith.constant 0 : index
    %221 = vector.load %arg29[%220, %c0_64] : memref<64x32xf32, #tpu.memory_space<vmem>>, vector<8x32xf32>
    tpu.vector_store %arg29[%220, %c0_64], %219 {strides = array<i32>} : memref<64x32xf32, #tpu.memory_space<vmem>>, vector<8x32xf32>,
    %c1_i32_65 = arith.constant 1 : i32
    %c8_i32_66 = arith.constant 8 : i32
    %222 = arith.muli %c1_i32_65, %c8_i32_66 : i32
    %223 = tpu.assume_multiple %222, 8 : i32
    %224 = arith.index_cast %223 : i32 to index
    %c0_67 = arith.constant 0 : index
    %225 = vector.load %arg27[%224, %c0_67] : memref<64x128xf32, #tpu.memory_space<vmem>>, vector<8x128xf32>
    %cst_68 = arith.constant dense<0.000000e+00> : vector<8x128xf32>
    %226 = tpu.matmul %219, %198, %cst_68 {dimension_numbers = #tpu.dot_dimension_numbers<[1], [0], [0], [1], [0, 0, 1, 1], [], []>} : vector<8x32xf32>, vector<32x128xf32>, vector<8x128xf32> -> vector<8x128xf32>
    %227 = arith.addf %225, %226 : vector<8x128xf32>
    %228 = arith.mulf %227, %8 : vector<8x128xf32>
    %229 = math.tanh %228 : vector<8x128xf32>
    %230 = arith.mulf %229, %8 : vector<8x128xf32>
    %231 = arith.addf %230, %11 : vector<8x128xf32>
    %232 = vector.extract_strided_slice %231 {offsets = [0, 0], sizes = [8, 32], strides = [1, 1]} : vector<8x128xf32> to vector<8x32xf32>
    %233 = vector.extract_strided_slice %231 {offsets = [0, 32], sizes = [8, 32], strides = [1, 1]} : vector<8x128xf32> to vector<8x32xf32>
    %234 = vector.extract_strided_slice %231 {offsets = [0, 64], sizes = [8, 32], strides = [1, 1]} : vector<8x128xf32> to vector<8x32xf32>
    %235 = vector.extract_strided_slice %231 {offsets = [0, 96], sizes = [8, 32], strides = [1, 1]} : vector<8x128xf32> to vector<8x32xf32>
    %236 = arith.mulf %233, %217 : vector<8x32xf32>
    %237 = arith.mulf %232, %234 : vector<8x32xf32>
    %238 = arith.addf %236, %237 : vector<8x32xf32>
    %239 = math.tanh %238 : vector<8x32xf32>
    %240 = arith.mulf %235, %239 : vector<8x32xf32>
    %241 = arith.index_cast %223 : i32 to index
    %c0_69 = arith.constant 0 : index
    %242 = vector.load %arg29[%241, %c0_69] : memref<64x32xf32, #tpu.memory_space<vmem>>, vector<8x32xf32>
    tpu.vector_store %arg29[%241, %c0_69], %240 {strides = array<i32>} : memref<64x32xf32, #tpu.memory_space<vmem>>, vector<8x32xf32>,
    %c2_i32_70 = arith.constant 2 : i32
    %c8_i32_71 = arith.constant 8 : i32
    %243 = arith.muli %c2_i32_70, %c8_i32_71 : i32
    %244 = tpu.assume_multiple %243, 8 : i32
    %245 = arith.index_cast %244 : i32 to index
    %c0_72 = arith.constant 0 : index
    %246 = vector.load %arg27[%245, %c0_72] : memref<64x128xf32, #tpu.memory_space<vmem>>, vector<8x128xf32>
    %cst_73 = arith.constant dense<0.000000e+00> : vector<8x128xf32>
    %247 = tpu.matmul %240, %198, %cst_73 {dimension_numbers = #tpu.dot_dimension_numbers<[1], [0], [0], [1], [0, 0, 1, 1], [], []>} : vector<8x32xf32>, vector<32x128xf32>, vector<8x128xf32> -> vector<8x128xf32>
    %248 = arith.addf %246, %247 : vector<8x128xf32>
    %249 = arith.mulf %248, %8 : vector<8x128xf32>
    %250 = math.tanh %249 : vector<8x128xf32>
    %251 = arith.mulf %250, %8 : vector<8x128xf32>
    %252 = arith.addf %251, %11 : vector<8x128xf32>
    %253 = vector.extract_strided_slice %252 {offsets = [0, 0], sizes = [8, 32], strides = [1, 1]} : vector<8x128xf32> to vector<8x32xf32>
    %254 = vector.extract_strided_slice %252 {offsets = [0, 32], sizes = [8, 32], strides = [1, 1]} : vector<8x128xf32> to vector<8x32xf32>
    %255 = vector.extract_strided_slice %252 {offsets = [0, 64], sizes = [8, 32], strides = [1, 1]} : vector<8x128xf32> to vector<8x32xf32>
    %256 = vector.extract_strided_slice %252 {offsets = [0, 96], sizes = [8, 32], strides = [1, 1]} : vector<8x128xf32> to vector<8x32xf32>
    %257 = arith.mulf %254, %238 : vector<8x32xf32>
    %258 = arith.mulf %253, %255 : vector<8x32xf32>
    %259 = arith.addf %257, %258 : vector<8x32xf32>
    %260 = math.tanh %259 : vector<8x32xf32>
    %261 = arith.mulf %256, %260 : vector<8x32xf32>
    %262 = arith.index_cast %244 : i32 to index
    %c0_74 = arith.constant 0 : index
    %263 = vector.load %arg29[%262, %c0_74] : memref<64x32xf32, #tpu.memory_space<vmem>>, vector<8x32xf32>
    tpu.vector_store %arg29[%262, %c0_74], %261 {strides = array<i32>} : memref<64x32xf32, #tpu.memory_space<vmem>>, vector<8x32xf32>,
    %c3_i32_75 = arith.constant 3 : i32
    %c8_i32_76 = arith.constant 8 : i32
    %264 = arith.muli %c3_i32_75, %c8_i32_76 : i32
    %265 = tpu.assume_multiple %264, 8 : i32
    %266 = arith.index_cast %265 : i32 to index
    %c0_77 = arith.constant 0 : index
    %267 = vector.load %arg27[%266, %c0_77] : memref<64x128xf32, #tpu.memory_space<vmem>>, vector<8x128xf32>
    %cst_78 = arith.constant dense<0.000000e+00> : vector<8x128xf32>
    %268 = tpu.matmul %261, %198, %cst_78 {dimension_numbers = #tpu.dot_dimension_numbers<[1], [0], [0], [1], [0, 0, 1, 1], [], []>} : vector<8x32xf32>, vector<32x128xf32>, vector<8x128xf32> -> vector<8x128xf32>
    %269 = arith.addf %267, %268 : vector<8x128xf32>
    %270 = arith.mulf %269, %8 : vector<8x128xf32>
    %271 = math.tanh %270 : vector<8x128xf32>
    %272 = arith.mulf %271, %8 : vector<8x128xf32>
    %273 = arith.addf %272, %11 : vector<8x128xf32>
    %274 = vector.extract_strided_slice %273 {offsets = [0, 0], sizes = [8, 32], strides = [1, 1]} : vector<8x128xf32> to vector<8x32xf32>
    %275 = vector.extract_strided_slice %273 {offsets = [0, 32], sizes = [8, 32], strides = [1, 1]} : vector<8x128xf32> to vector<8x32xf32>
    %276 = vector.extract_strided_slice %273 {offsets = [0, 64], sizes = [8, 32], strides = [1, 1]} : vector<8x128xf32> to vector<8x32xf32>
    %277 = vector.extract_strided_slice %273 {offsets = [0, 96], sizes = [8, 32], strides = [1, 1]} : vector<8x128xf32> to vector<8x32xf32>
    %278 = arith.mulf %275, %259 : vector<8x32xf32>
    %279 = arith.mulf %274, %276 : vector<8x32xf32>
    %280 = arith.addf %278, %279 : vector<8x32xf32>
    %281 = math.tanh %280 : vector<8x32xf32>
    %282 = arith.mulf %277, %281 : vector<8x32xf32>
    %283 = arith.index_cast %265 : i32 to index
    %c0_79 = arith.constant 0 : index
    %284 = vector.load %arg29[%283, %c0_79] : memref<64x32xf32, #tpu.memory_space<vmem>>, vector<8x32xf32>
    tpu.vector_store %arg29[%283, %c0_79], %282 {strides = array<i32>} : memref<64x32xf32, #tpu.memory_space<vmem>>, vector<8x32xf32>,
    %c4_i32_80 = arith.constant 4 : i32
    %c8_i32_81 = arith.constant 8 : i32
    %285 = arith.muli %c4_i32_80, %c8_i32_81 : i32
    %286 = tpu.assume_multiple %285, 8 : i32
    %287 = arith.index_cast %286 : i32 to index
    %c0_82 = arith.constant 0 : index
    %288 = vector.load %arg27[%287, %c0_82] : memref<64x128xf32, #tpu.memory_space<vmem>>, vector<8x128xf32>
    %cst_83 = arith.constant dense<0.000000e+00> : vector<8x128xf32>
    %289 = tpu.matmul %282, %198, %cst_83 {dimension_numbers = #tpu.dot_dimension_numbers<[1], [0], [0], [1], [0, 0, 1, 1], [], []>} : vector<8x32xf32>, vector<32x128xf32>, vector<8x128xf32> -> vector<8x128xf32>
    %290 = arith.addf %288, %289 : vector<8x128xf32>
    %291 = arith.mulf %290, %8 : vector<8x128xf32>
    %292 = math.tanh %291 : vector<8x128xf32>
    %293 = arith.mulf %292, %8 : vector<8x128xf32>
    %294 = arith.addf %293, %11 : vector<8x128xf32>
    %295 = vector.extract_strided_slice %294 {offsets = [0, 0], sizes = [8, 32], strides = [1, 1]} : vector<8x128xf32> to vector<8x32xf32>
    %296 = vector.extract_strided_slice %294 {offsets = [0, 32], sizes = [8, 32], strides = [1, 1]} : vector<8x128xf32> to vector<8x32xf32>
    %297 = vector.extract_strided_slice %294 {offsets = [0, 64], sizes = [8, 32], strides = [1, 1]} : vector<8x128xf32> to vector<8x32xf32>
    %298 = vector.extract_strided_slice %294 {offsets = [0, 96], sizes = [8, 32], strides = [1, 1]} : vector<8x128xf32> to vector<8x32xf32>
    %299 = arith.mulf %296, %280 : vector<8x32xf32>
    %300 = arith.mulf %295, %297 : vector<8x32xf32>
    %301 = arith.addf %299, %300 : vector<8x32xf32>
    %302 = math.tanh %301 : vector<8x32xf32>
    %303 = arith.mulf %298, %302 : vector<8x32xf32>
    %304 = arith.index_cast %286 : i32 to index
    %c0_84 = arith.constant 0 : index
    %305 = vector.load %arg29[%304, %c0_84] : memref<64x32xf32, #tpu.memory_space<vmem>>, vector<8x32xf32>
    tpu.vector_store %arg29[%304, %c0_84], %303 {strides = array<i32>} : memref<64x32xf32, #tpu.memory_space<vmem>>, vector<8x32xf32>,
    %c5_i32_85 = arith.constant 5 : i32
    %c8_i32_86 = arith.constant 8 : i32
    %306 = arith.muli %c5_i32_85, %c8_i32_86 : i32
    %307 = tpu.assume_multiple %306, 8 : i32
    %308 = arith.index_cast %307 : i32 to index
    %c0_87 = arith.constant 0 : index
    %309 = vector.load %arg27[%308, %c0_87] : memref<64x128xf32, #tpu.memory_space<vmem>>, vector<8x128xf32>
    %cst_88 = arith.constant dense<0.000000e+00> : vector<8x128xf32>
    %310 = tpu.matmul %303, %198, %cst_88 {dimension_numbers = #tpu.dot_dimension_numbers<[1], [0], [0], [1], [0, 0, 1, 1], [], []>} : vector<8x32xf32>, vector<32x128xf32>, vector<8x128xf32> -> vector<8x128xf32>
    %311 = arith.addf %309, %310 : vector<8x128xf32>
    %312 = arith.mulf %311, %8 : vector<8x128xf32>
    %313 = math.tanh %312 : vector<8x128xf32>
    %314 = arith.mulf %313, %8 : vector<8x128xf32>
    %315 = arith.addf %314, %11 : vector<8x128xf32>
    %316 = vector.extract_strided_slice %315 {offsets = [0, 0], sizes = [8, 32], strides = [1, 1]} : vector<8x128xf32> to vector<8x32xf32>
    %317 = vector.extract_strided_slice %315 {offsets = [0, 32], sizes = [8, 32], strides = [1, 1]} : vector<8x128xf32> to vector<8x32xf32>
    %318 = vector.extract_strided_slice %315 {offsets = [0, 64], sizes = [8, 32], strides = [1, 1]} : vector<8x128xf32> to vector<8x32xf32>
    %319 = vector.extract_strided_slice %315 {offsets = [0, 96], sizes = [8, 32], strides = [1, 1]} : vector<8x128xf32> to vector<8x32xf32>
    %320 = arith.mulf %317, %301 : vector<8x32xf32>
    %321 = arith.mulf %316, %318 : vector<8x32xf32>
    %322 = arith.addf %320, %321 : vector<8x32xf32>
    %323 = math.tanh %322 : vector<8x32xf32>
    %324 = arith.mulf %319, %323 : vector<8x32xf32>
    %325 = arith.index_cast %307 : i32 to index
    %c0_89 = arith.constant 0 : index
    %326 = vector.load %arg29[%325, %c0_89] : memref<64x32xf32, #tpu.memory_space<vmem>>, vector<8x32xf32>
    tpu.vector_store %arg29[%325, %c0_89], %324 {strides = array<i32>} : memref<64x32xf32, #tpu.memory_space<vmem>>, vector<8x32xf32>,
    %c6_i32_90 = arith.constant 6 : i32
    %c8_i32_91 = arith.constant 8 : i32
    %327 = arith.muli %c6_i32_90, %c8_i32_91 : i32
    %328 = tpu.assume_multiple %327, 8 : i32
    %329 = arith.index_cast %328 : i32 to index
    %c0_92 = arith.constant 0 : index
    %330 = vector.load %arg27[%329, %c0_92] : memref<64x128xf32, #tpu.memory_space<vmem>>, vector<8x128xf32>
    %cst_93 = arith.constant dense<0.000000e+00> : vector<8x128xf32>
    %331 = tpu.matmul %324, %198, %cst_93 {dimension_numbers = #tpu.dot_dimension_numbers<[1], [0], [0], [1], [0, 0, 1, 1], [], []>} : vector<8x32xf32>, vector<32x128xf32>, vector<8x128xf32> -> vector<8x128xf32>
    %332 = arith.addf %330, %331 : vector<8x128xf32>
    %333 = arith.mulf %332, %8 : vector<8x128xf32>
    %334 = math.tanh %333 : vector<8x128xf32>
    %335 = arith.mulf %334, %8 : vector<8x128xf32>
    %336 = arith.addf %335, %11 : vector<8x128xf32>
    %337 = vector.extract_strided_slice %336 {offsets = [0, 0], sizes = [8, 32], strides = [1, 1]} : vector<8x128xf32> to vector<8x32xf32>
    %338 = vector.extract_strided_slice %336 {offsets = [0, 32], sizes = [8, 32], strides = [1, 1]} : vector<8x128xf32> to vector<8x32xf32>
    %339 = vector.extract_strided_slice %336 {offsets = [0, 64], sizes = [8, 32], strides = [1, 1]} : vector<8x128xf32> to vector<8x32xf32>
    %340 = vector.extract_strided_slice %336 {offsets = [0, 96], sizes = [8, 32], strides = [1, 1]} : vector<8x128xf32> to vector<8x32xf32>
    %341 = arith.mulf %338, %322 : vector<8x32xf32>
    %342 = arith.mulf %337, %339 : vector<8x32xf32>
    %343 = arith.addf %341, %342 : vector<8x32xf32>
    %344 = math.tanh %343 : vector<8x32xf32>
    %345 = arith.mulf %340, %344 : vector<8x32xf32>
    %346 = arith.index_cast %328 : i32 to index
    %c0_94 = arith.constant 0 : index
    %347 = vector.load %arg29[%346, %c0_94] : memref<64x32xf32, #tpu.memory_space<vmem>>, vector<8x32xf32>
    tpu.vector_store %arg29[%346, %c0_94], %345 {strides = array<i32>} : memref<64x32xf32, #tpu.memory_space<vmem>>, vector<8x32xf32>,
    %c7_i32_95 = arith.constant 7 : i32
    %c8_i32_96 = arith.constant 8 : i32
    %348 = arith.muli %c7_i32_95, %c8_i32_96 : i32
    %349 = tpu.assume_multiple %348, 8 : i32
    %350 = arith.index_cast %349 : i32 to index
    %c0_97 = arith.constant 0 : index
    %351 = vector.load %arg27[%350, %c0_97] : memref<64x128xf32, #tpu.memory_space<vmem>>, vector<8x128xf32>
    %cst_98 = arith.constant dense<0.000000e+00> : vector<8x128xf32>
    %352 = tpu.matmul %345, %198, %cst_98 {dimension_numbers = #tpu.dot_dimension_numbers<[1], [0], [0], [1], [0, 0, 1, 1], [], []>} : vector<8x32xf32>, vector<32x128xf32>, vector<8x128xf32> -> vector<8x128xf32>
    %353 = arith.addf %351, %352 : vector<8x128xf32>
    %354 = arith.mulf %353, %8 : vector<8x128xf32>
    %355 = math.tanh %354 : vector<8x128xf32>
    %356 = arith.mulf %355, %8 : vector<8x128xf32>
    %357 = arith.addf %356, %11 : vector<8x128xf32>
    %358 = vector.extract_strided_slice %357 {offsets = [0, 0], sizes = [8, 32], strides = [1, 1]} : vector<8x128xf32> to vector<8x32xf32>
    %359 = vector.extract_strided_slice %357 {offsets = [0, 32], sizes = [8, 32], strides = [1, 1]} : vector<8x128xf32> to vector<8x32xf32>
    %360 = vector.extract_strided_slice %357 {offsets = [0, 64], sizes = [8, 32], strides = [1, 1]} : vector<8x128xf32> to vector<8x32xf32>
    %361 = vector.extract_strided_slice %357 {offsets = [0, 96], sizes = [8, 32], strides = [1, 1]} : vector<8x128xf32> to vector<8x32xf32>
    %362 = arith.mulf %359, %343 : vector<8x32xf32>
    %363 = arith.mulf %358, %360 : vector<8x32xf32>
    %364 = arith.addf %362, %363 : vector<8x32xf32>
    %365 = math.tanh %364 : vector<8x32xf32>
    %366 = arith.mulf %361, %365 : vector<8x32xf32>
    %367 = arith.index_cast %349 : i32 to index
    %c0_99 = arith.constant 0 : index
    %368 = vector.load %arg29[%367, %c0_99] : memref<64x32xf32, #tpu.memory_space<vmem>>, vector<8x32xf32>
    tpu.vector_store %arg29[%367, %c0_99], %366 {strides = array<i32>} : memref<64x32xf32, #tpu.memory_space<vmem>>, vector<8x32xf32>,
    %c8_i32_100 = arith.constant 8 : i32
    %c0_101 = arith.constant 0 : index
    %c0_102 = arith.constant 0 : index
    %369 = vector.load %arg29[%c0_101, %c0_102] : memref<64x32xf32, #tpu.memory_space<vmem>>, vector<64x32xf32>
    %370 = arith.truncf %369 : vector<64x32xf32> to vector<64x32xbf16>
    %c0_103 = arith.constant 0 : index
    %c0_104 = arith.constant 0 : index
    %371 = vector.load %arg7[%c0_103, %c0_104] : memref<32x128xbf16, #tpu.memory_space<vmem>>, vector<32x128xbf16>
    %cst_105 = arith.constant dense<0.000000e+00> : vector<64x128xf32>
    %372 = tpu.matmul %370, %371, %cst_105 {dimension_numbers = #tpu.dot_dimension_numbers<[1], [0], [0], [1], [0, 0, 1, 1], [], []>} : vector<64x32xbf16>, vector<32x128xbf16>, vector<64x128xf32> -> vector<64x128xf32>
    %c0_106 = arith.constant 0 : index
    %c0_107 = arith.constant 0 : index
    %373 = vector.load %arg9[%c0_106, %c0_107] : memref<1x128xf32, #tpu.memory_space<vmem>>, vector<1x128xf32>
    %374 = vector.broadcast %373 : vector<1x128xf32> to vector<64x128xf32>
    %375 = arith.addf %372, %374 : vector<64x128xf32>
    %c0_108 = arith.constant 0 : index
    %c0_109 = arith.constant 0 : index
    %376 = vector.load %arg27[%c0_108, %c0_109] : memref<64x128xf32, #tpu.memory_space<vmem>>, vector<64x128xf32>
    tpu.vector_store %arg27[%c0_108, %c0_109], %375 {strides = array<i32>} : memref<64x128xf32, #tpu.memory_space<vmem>>, vector<64x128xf32>,
    %c0_110 = arith.constant 0 : index
    %c0_111 = arith.constant 0 : index
    %377 = vector.load %arg8[%c0_110, %c0_111] : memref<32x128xf32, #tpu.memory_space<vmem>>, vector<32x128xf32>
    %cst_112 = arith.constant 0.000000e+00 : f32
    %378 = vector.broadcast %cst_112 : f32 to vector<8x32xf32>
    %cst_113 = arith.constant 0.000000e+00 : f32
    %379 = vector.broadcast %cst_113 : f32 to vector<8x32xf32>
    %c0_i32_114 = arith.constant 0 : i32
    %c8_i32_115 = arith.constant 8 : i32
    %380 = arith.muli %c0_i32_114, %c8_i32_115 : i32
    %381 = tpu.assume_multiple %380, 8 : i32
    %382 = arith.index_cast %381 : i32 to index
    %c0_116 = arith.constant 0 : index
    %383 = vector.load %arg27[%382, %c0_116] : memref<64x128xf32, #tpu.memory_space<vmem>>, vector<8x128xf32>
    %cst_117 = arith.constant dense<0.000000e+00> : vector<8x128xf32>
    %384 = tpu.matmul %378, %377, %cst_117 {dimension_numbers = #tpu.dot_dimension_numbers<[1], [0], [0], [1], [0, 0, 1, 1], [], []>} : vector<8x32xf32>, vector<32x128xf32>, vector<8x128xf32> -> vector<8x128xf32>
    %385 = arith.addf %383, %384 : vector<8x128xf32>
    %386 = arith.mulf %385, %8 : vector<8x128xf32>
    %387 = math.tanh %386 : vector<8x128xf32>
    %388 = arith.mulf %387, %8 : vector<8x128xf32>
    %389 = arith.addf %388, %11 : vector<8x128xf32>
    %390 = vector.extract_strided_slice %389 {offsets = [0, 0], sizes = [8, 32], strides = [1, 1]} : vector<8x128xf32> to vector<8x32xf32>
    %391 = vector.extract_strided_slice %389 {offsets = [0, 32], sizes = [8, 32], strides = [1, 1]} : vector<8x128xf32> to vector<8x32xf32>
    %392 = vector.extract_strided_slice %389 {offsets = [0, 64], sizes = [8, 32], strides = [1, 1]} : vector<8x128xf32> to vector<8x32xf32>
    %393 = vector.extract_strided_slice %389 {offsets = [0, 96], sizes = [8, 32], strides = [1, 1]} : vector<8x128xf32> to vector<8x32xf32>
    %394 = arith.mulf %391, %379 : vector<8x32xf32>
    %395 = arith.mulf %390, %392 : vector<8x32xf32>
    %396 = arith.addf %394, %395 : vector<8x32xf32>
    %397 = math.tanh %396 : vector<8x32xf32>
    %398 = arith.mulf %393, %397 : vector<8x32xf32>
    %399 = arith.index_cast %381 : i32 to index
    %c0_118 = arith.constant 0 : index
    %400 = vector.load %arg28[%399, %c0_118] : memref<64x32xf32, #tpu.memory_space<vmem>>, vector<8x32xf32>
    tpu.vector_store %arg28[%399, %c0_118], %398 {strides = array<i32>} : memref<64x32xf32, #tpu.memory_space<vmem>>, vector<8x32xf32>,
    %c1_i32_119 = arith.constant 1 : i32
    %c8_i32_120 = arith.constant 8 : i32
    %401 = arith.muli %c1_i32_119, %c8_i32_120 : i32
    %402 = tpu.assume_multiple %401, 8 : i32
    %403 = arith.index_cast %402 : i32 to index
    %c0_121 = arith.constant 0 : index
    %404 = vector.load %arg27[%403, %c0_121] : memref<64x128xf32, #tpu.memory_space<vmem>>, vector<8x128xf32>
    %cst_122 = arith.constant dense<0.000000e+00> : vector<8x128xf32>
    %405 = tpu.matmul %398, %377, %cst_122 {dimension_numbers = #tpu.dot_dimension_numbers<[1], [0], [0], [1], [0, 0, 1, 1], [], []>} : vector<8x32xf32>, vector<32x128xf32>, vector<8x128xf32> -> vector<8x128xf32>
    %406 = arith.addf %404, %405 : vector<8x128xf32>
    %407 = arith.mulf %406, %8 : vector<8x128xf32>
    %408 = math.tanh %407 : vector<8x128xf32>
    %409 = arith.mulf %408, %8 : vector<8x128xf32>
    %410 = arith.addf %409, %11 : vector<8x128xf32>
    %411 = vector.extract_strided_slice %410 {offsets = [0, 0], sizes = [8, 32], strides = [1, 1]} : vector<8x128xf32> to vector<8x32xf32>
    %412 = vector.extract_strided_slice %410 {offsets = [0, 32], sizes = [8, 32], strides = [1, 1]} : vector<8x128xf32> to vector<8x32xf32>
    %413 = vector.extract_strided_slice %410 {offsets = [0, 64], sizes = [8, 32], strides = [1, 1]} : vector<8x128xf32> to vector<8x32xf32>
    %414 = vector.extract_strided_slice %410 {offsets = [0, 96], sizes = [8, 32], strides = [1, 1]} : vector<8x128xf32> to vector<8x32xf32>
    %415 = arith.mulf %412, %396 : vector<8x32xf32>
    %416 = arith.mulf %411, %413 : vector<8x32xf32>
    %417 = arith.addf %415, %416 : vector<8x32xf32>
    %418 = math.tanh %417 : vector<8x32xf32>
    %419 = arith.mulf %414, %418 : vector<8x32xf32>
    %420 = arith.index_cast %402 : i32 to index
    %c0_123 = arith.constant 0 : index
    %421 = vector.load %arg28[%420, %c0_123] : memref<64x32xf32, #tpu.memory_space<vmem>>, vector<8x32xf32>
    tpu.vector_store %arg28[%420, %c0_123], %419 {strides = array<i32>} : memref<64x32xf32, #tpu.memory_space<vmem>>, vector<8x32xf32>,
    %c2_i32_124 = arith.constant 2 : i32
    %c8_i32_125 = arith.constant 8 : i32
    %422 = arith.muli %c2_i32_124, %c8_i32_125 : i32
    %423 = tpu.assume_multiple %422, 8 : i32
    %424 = arith.index_cast %423 : i32 to index
    %c0_126 = arith.constant 0 : index
    %425 = vector.load %arg27[%424, %c0_126] : memref<64x128xf32, #tpu.memory_space<vmem>>, vector<8x128xf32>
    %cst_127 = arith.constant dense<0.000000e+00> : vector<8x128xf32>
    %426 = tpu.matmul %419, %377, %cst_127 {dimension_numbers = #tpu.dot_dimension_numbers<[1], [0], [0], [1], [0, 0, 1, 1], [], []>} : vector<8x32xf32>, vector<32x128xf32>, vector<8x128xf32> -> vector<8x128xf32>
    %427 = arith.addf %425, %426 : vector<8x128xf32>
    %428 = arith.mulf %427, %8 : vector<8x128xf32>
    %429 = math.tanh %428 : vector<8x128xf32>
    %430 = arith.mulf %429, %8 : vector<8x128xf32>
    %431 = arith.addf %430, %11 : vector<8x128xf32>
    %432 = vector.extract_strided_slice %431 {offsets = [0, 0], sizes = [8, 32], strides = [1, 1]} : vector<8x128xf32> to vector<8x32xf32>
    %433 = vector.extract_strided_slice %431 {offsets = [0, 32], sizes = [8, 32], strides = [1, 1]} : vector<8x128xf32> to vector<8x32xf32>
    %434 = vector.extract_strided_slice %431 {offsets = [0, 64], sizes = [8, 32], strides = [1, 1]} : vector<8x128xf32> to vector<8x32xf32>
    %435 = vector.extract_strided_slice %431 {offsets = [0, 96], sizes = [8, 32], strides = [1, 1]} : vector<8x128xf32> to vector<8x32xf32>
    %436 = arith.mulf %433, %417 : vector<8x32xf32>
    %437 = arith.mulf %432, %434 : vector<8x32xf32>
    %438 = arith.addf %436, %437 : vector<8x32xf32>
    %439 = math.tanh %438 : vector<8x32xf32>
    %440 = arith.mulf %435, %439 : vector<8x32xf32>
    %441 = arith.index_cast %423 : i32 to index
    %c0_128 = arith.constant 0 : index
    %442 = vector.load %arg28[%441, %c0_128] : memref<64x32xf32, #tpu.memory_space<vmem>>, vector<8x32xf32>
    tpu.vector_store %arg28[%441, %c0_128], %440 {strides = array<i32>} : memref<64x32xf32, #tpu.memory_space<vmem>>, vector<8x32xf32>,
    %c3_i32_129 = arith.constant 3 : i32
    %c8_i32_130 = arith.constant 8 : i32
    %443 = arith.muli %c3_i32_129, %c8_i32_130 : i32
    %444 = tpu.assume_multiple %443, 8 : i32
    %445 = arith.index_cast %444 : i32 to index
    %c0_131 = arith.constant 0 : index
    %446 = vector.load %arg27[%445, %c0_131] : memref<64x128xf32, #tpu.memory_space<vmem>>, vector<8x128xf32>
    %cst_132 = arith.constant dense<0.000000e+00> : vector<8x128xf32>
    %447 = tpu.matmul %440, %377, %cst_132 {dimension_numbers = #tpu.dot_dimension_numbers<[1], [0], [0], [1], [0, 0, 1, 1], [], []>} : vector<8x32xf32>, vector<32x128xf32>, vector<8x128xf32> -> vector<8x128xf32>
    %448 = arith.addf %446, %447 : vector<8x128xf32>
    %449 = arith.mulf %448, %8 : vector<8x128xf32>
    %450 = math.tanh %449 : vector<8x128xf32>
    %451 = arith.mulf %450, %8 : vector<8x128xf32>
    %452 = arith.addf %451, %11 : vector<8x128xf32>
    %453 = vector.extract_strided_slice %452 {offsets = [0, 0], sizes = [8, 32], strides = [1, 1]} : vector<8x128xf32> to vector<8x32xf32>
    %454 = vector.extract_strided_slice %452 {offsets = [0, 32], sizes = [8, 32], strides = [1, 1]} : vector<8x128xf32> to vector<8x32xf32>
    %455 = vector.extract_strided_slice %452 {offsets = [0, 64], sizes = [8, 32], strides = [1, 1]} : vector<8x128xf32> to vector<8x32xf32>
    %456 = vector.extract_strided_slice %452 {offsets = [0, 96], sizes = [8, 32], strides = [1, 1]} : vector<8x128xf32> to vector<8x32xf32>
    %457 = arith.mulf %454, %438 : vector<8x32xf32>
    %458 = arith.mulf %453, %455 : vector<8x32xf32>
    %459 = arith.addf %457, %458 : vector<8x32xf32>
    %460 = math.tanh %459 : vector<8x32xf32>
    %461 = arith.mulf %456, %460 : vector<8x32xf32>
    %462 = arith.index_cast %444 : i32 to index
    %c0_133 = arith.constant 0 : index
    %463 = vector.load %arg28[%462, %c0_133] : memref<64x32xf32, #tpu.memory_space<vmem>>, vector<8x32xf32>
    tpu.vector_store %arg28[%462, %c0_133], %461 {strides = array<i32>} : memref<64x32xf32, #tpu.memory_space<vmem>>, vector<8x32xf32>,
    %c4_i32_134 = arith.constant 4 : i32
    %c8_i32_135 = arith.constant 8 : i32
    %464 = arith.muli %c4_i32_134, %c8_i32_135 : i32
    %465 = tpu.assume_multiple %464, 8 : i32
    %466 = arith.index_cast %465 : i32 to index
    %c0_136 = arith.constant 0 : index
    %467 = vector.load %arg27[%466, %c0_136] : memref<64x128xf32, #tpu.memory_space<vmem>>, vector<8x128xf32>
    %cst_137 = arith.constant dense<0.000000e+00> : vector<8x128xf32>
    %468 = tpu.matmul %461, %377, %cst_137 {dimension_numbers = #tpu.dot_dimension_numbers<[1], [0], [0], [1], [0, 0, 1, 1], [], []>} : vector<8x32xf32>, vector<32x128xf32>, vector<8x128xf32> -> vector<8x128xf32>
    %469 = arith.addf %467, %468 : vector<8x128xf32>
    %470 = arith.mulf %469, %8 : vector<8x128xf32>
    %471 = math.tanh %470 : vector<8x128xf32>
    %472 = arith.mulf %471, %8 : vector<8x128xf32>
    %473 = arith.addf %472, %11 : vector<8x128xf32>
    %474 = vector.extract_strided_slice %473 {offsets = [0, 0], sizes = [8, 32], strides = [1, 1]} : vector<8x128xf32> to vector<8x32xf32>
    %475 = vector.extract_strided_slice %473 {offsets = [0, 32], sizes = [8, 32], strides = [1, 1]} : vector<8x128xf32> to vector<8x32xf32>
    %476 = vector.extract_strided_slice %473 {offsets = [0, 64], sizes = [8, 32], strides = [1, 1]} : vector<8x128xf32> to vector<8x32xf32>
    %477 = vector.extract_strided_slice %473 {offsets = [0, 96], sizes = [8, 32], strides = [1, 1]} : vector<8x128xf32> to vector<8x32xf32>
    %478 = arith.mulf %475, %459 : vector<8x32xf32>
    %479 = arith.mulf %474, %476 : vector<8x32xf32>
    %480 = arith.addf %478, %479 : vector<8x32xf32>
    %481 = math.tanh %480 : vector<8x32xf32>
    %482 = arith.mulf %477, %481 : vector<8x32xf32>
    %483 = arith.index_cast %465 : i32 to index
    %c0_138 = arith.constant 0 : index
    %484 = vector.load %arg28[%483, %c0_138] : memref<64x32xf32, #tpu.memory_space<vmem>>, vector<8x32xf32>
    tpu.vector_store %arg28[%483, %c0_138], %482 {strides = array<i32>} : memref<64x32xf32, #tpu.memory_space<vmem>>, vector<8x32xf32>,
    %c5_i32_139 = arith.constant 5 : i32
    %c8_i32_140 = arith.constant 8 : i32
    %485 = arith.muli %c5_i32_139, %c8_i32_140 : i32
    %486 = tpu.assume_multiple %485, 8 : i32
    %487 = arith.index_cast %486 : i32 to index
    %c0_141 = arith.constant 0 : index
    %488 = vector.load %arg27[%487, %c0_141] : memref<64x128xf32, #tpu.memory_space<vmem>>, vector<8x128xf32>
    %cst_142 = arith.constant dense<0.000000e+00> : vector<8x128xf32>
    %489 = tpu.matmul %482, %377, %cst_142 {dimension_numbers = #tpu.dot_dimension_numbers<[1], [0], [0], [1], [0, 0, 1, 1], [], []>} : vector<8x32xf32>, vector<32x128xf32>, vector<8x128xf32> -> vector<8x128xf32>
    %490 = arith.addf %488, %489 : vector<8x128xf32>
    %491 = arith.mulf %490, %8 : vector<8x128xf32>
    %492 = math.tanh %491 : vector<8x128xf32>
    %493 = arith.mulf %492, %8 : vector<8x128xf32>
    %494 = arith.addf %493, %11 : vector<8x128xf32>
    %495 = vector.extract_strided_slice %494 {offsets = [0, 0], sizes = [8, 32], strides = [1, 1]} : vector<8x128xf32> to vector<8x32xf32>
    %496 = vector.extract_strided_slice %494 {offsets = [0, 32], sizes = [8, 32], strides = [1, 1]} : vector<8x128xf32> to vector<8x32xf32>
    %497 = vector.extract_strided_slice %494 {offsets = [0, 64], sizes = [8, 32], strides = [1, 1]} : vector<8x128xf32> to vector<8x32xf32>
    %498 = vector.extract_strided_slice %494 {offsets = [0, 96], sizes = [8, 32], strides = [1, 1]} : vector<8x128xf32> to vector<8x32xf32>
    %499 = arith.mulf %496, %480 : vector<8x32xf32>
    %500 = arith.mulf %495, %497 : vector<8x32xf32>
    %501 = arith.addf %499, %500 : vector<8x32xf32>
    %502 = math.tanh %501 : vector<8x32xf32>
    %503 = arith.mulf %498, %502 : vector<8x32xf32>
    %504 = arith.index_cast %486 : i32 to index
    %c0_143 = arith.constant 0 : index
    %505 = vector.load %arg28[%504, %c0_143] : memref<64x32xf32, #tpu.memory_space<vmem>>, vector<8x32xf32>
    tpu.vector_store %arg28[%504, %c0_143], %503 {strides = array<i32>} : memref<64x32xf32, #tpu.memory_space<vmem>>, vector<8x32xf32>,
    %c6_i32_144 = arith.constant 6 : i32
    %c8_i32_145 = arith.constant 8 : i32
    %506 = arith.muli %c6_i32_144, %c8_i32_145 : i32
    %507 = tpu.assume_multiple %506, 8 : i32
    %508 = arith.index_cast %507 : i32 to index
    %c0_146 = arith.constant 0 : index
    %509 = vector.load %arg27[%508, %c0_146] : memref<64x128xf32, #tpu.memory_space<vmem>>, vector<8x128xf32>
    %cst_147 = arith.constant dense<0.000000e+00> : vector<8x128xf32>
    %510 = tpu.matmul %503, %377, %cst_147 {dimension_numbers = #tpu.dot_dimension_numbers<[1], [0], [0], [1], [0, 0, 1, 1], [], []>} : vector<8x32xf32>, vector<32x128xf32>, vector<8x128xf32> -> vector<8x128xf32>
    %511 = arith.addf %509, %510 : vector<8x128xf32>
    %512 = arith.mulf %511, %8 : vector<8x128xf32>
    %513 = math.tanh %512 : vector<8x128xf32>
    %514 = arith.mulf %513, %8 : vector<8x128xf32>
    %515 = arith.addf %514, %11 : vector<8x128xf32>
    %516 = vector.extract_strided_slice %515 {offsets = [0, 0], sizes = [8, 32], strides = [1, 1]} : vector<8x128xf32> to vector<8x32xf32>
    %517 = vector.extract_strided_slice %515 {offsets = [0, 32], sizes = [8, 32], strides = [1, 1]} : vector<8x128xf32> to vector<8x32xf32>
    %518 = vector.extract_strided_slice %515 {offsets = [0, 64], sizes = [8, 32], strides = [1, 1]} : vector<8x128xf32> to vector<8x32xf32>
    %519 = vector.extract_strided_slice %515 {offsets = [0, 96], sizes = [8, 32], strides = [1, 1]} : vector<8x128xf32> to vector<8x32xf32>
    %520 = arith.mulf %517, %501 : vector<8x32xf32>
    %521 = arith.mulf %516, %518 : vector<8x32xf32>
    %522 = arith.addf %520, %521 : vector<8x32xf32>
    %523 = math.tanh %522 : vector<8x32xf32>
    %524 = arith.mulf %519, %523 : vector<8x32xf32>
    %525 = arith.index_cast %507 : i32 to index
    %c0_148 = arith.constant 0 : index
    %526 = vector.load %arg28[%525, %c0_148] : memref<64x32xf32, #tpu.memory_space<vmem>>, vector<8x32xf32>
    tpu.vector_store %arg28[%525, %c0_148], %524 {strides = array<i32>} : memref<64x32xf32, #tpu.memory_space<vmem>>, vector<8x32xf32>,
    %c7_i32_149 = arith.constant 7 : i32
    %c8_i32_150 = arith.constant 8 : i32
    %527 = arith.muli %c7_i32_149, %c8_i32_150 : i32
    %528 = tpu.assume_multiple %527, 8 : i32
    %529 = arith.index_cast %528 : i32 to index
    %c0_151 = arith.constant 0 : index
    %530 = vector.load %arg27[%529, %c0_151] : memref<64x128xf32, #tpu.memory_space<vmem>>, vector<8x128xf32>
    %cst_152 = arith.constant dense<0.000000e+00> : vector<8x128xf32>
    %531 = tpu.matmul %524, %377, %cst_152 {dimension_numbers = #tpu.dot_dimension_numbers<[1], [0], [0], [1], [0, 0, 1, 1], [], []>} : vector<8x32xf32>, vector<32x128xf32>, vector<8x128xf32> -> vector<8x128xf32>
    %532 = arith.addf %530, %531 : vector<8x128xf32>
    %533 = arith.mulf %532, %8 : vector<8x128xf32>
    %534 = math.tanh %533 : vector<8x128xf32>
    %535 = arith.mulf %534, %8 : vector<8x128xf32>
    %536 = arith.addf %535, %11 : vector<8x128xf32>
    %537 = vector.extract_strided_slice %536 {offsets = [0, 0], sizes = [8, 32], strides = [1, 1]} : vector<8x128xf32> to vector<8x32xf32>
    %538 = vector.extract_strided_slice %536 {offsets = [0, 32], sizes = [8, 32], strides = [1, 1]} : vector<8x128xf32> to vector<8x32xf32>
    %539 = vector.extract_strided_slice %536 {offsets = [0, 64], sizes = [8, 32], strides = [1, 1]} : vector<8x128xf32> to vector<8x32xf32>
    %540 = vector.extract_strided_slice %536 {offsets = [0, 96], sizes = [8, 32], strides = [1, 1]} : vector<8x128xf32> to vector<8x32xf32>
    %541 = arith.mulf %538, %522 : vector<8x32xf32>
    %542 = arith.mulf %537, %539 : vector<8x32xf32>
    %543 = arith.addf %541, %542 : vector<8x32xf32>
    %544 = math.tanh %543 : vector<8x32xf32>
    %545 = arith.mulf %540, %544 : vector<8x32xf32>
    %546 = arith.index_cast %528 : i32 to index
    %c0_153 = arith.constant 0 : index
    %547 = vector.load %arg28[%546, %c0_153] : memref<64x32xf32, #tpu.memory_space<vmem>>, vector<8x32xf32>
    tpu.vector_store %arg28[%546, %c0_153], %545 {strides = array<i32>} : memref<64x32xf32, #tpu.memory_space<vmem>>, vector<8x32xf32>,
    %c8_i32_154 = arith.constant 8 : i32
    %cst_155 = arith.constant dense<0.000000e+00> : vector<8xf32>
    %548 = vector.multi_reduction <add>, %545, %cst_155 [1] : vector<8x32xf32> to vector<8xf32>
    %549 = vector.shape_cast %548 : vector<8xf32> to vector<8x1xf32>
    %cst_156 = arith.constant 3.200000e+01 : f32
    %550 = vector.broadcast %cst_156 : f32 to vector<8x1xf32>
    %551 = arith.divf %549, %550 : vector<8x1xf32>
    %552 = vector.broadcast %551 : vector<8x1xf32> to vector<8x32xf32>
    %553 = arith.subf %545, %552 : vector<8x32xf32>
    %554 = arith.mulf %553, %553 : vector<8x32xf32>
    %cst_157 = arith.constant dense<0.000000e+00> : vector<8xf32>
    %555 = vector.multi_reduction <add>, %554, %cst_157 [1] : vector<8x32xf32> to vector<8xf32>
    %556 = vector.shape_cast %555 : vector<8xf32> to vector<8x1xf32>
    %cst_158 = arith.constant 3.200000e+01 : f32
    %557 = vector.broadcast %cst_158 : f32 to vector<8x1xf32>
    %558 = arith.divf %556, %557 : vector<8x1xf32>
    %559 = vector.broadcast %551 : vector<8x1xf32> to vector<8x32xf32>
    %560 = arith.subf %545, %559 : vector<8x32xf32>
    %cst_159 = arith.constant 9.99999974E-6 : f32
    %561 = vector.broadcast %cst_159 : f32 to vector<8x1xf32>
    %562 = arith.addf %558, %561 : vector<8x1xf32>
    %563 = math.rsqrt %562 : vector<8x1xf32>
    %564 = vector.broadcast %563 : vector<8x1xf32> to vector<8x32xf32>
    %565 = arith.mulf %560, %564 : vector<8x32xf32>
    %c0_160 = arith.constant 0 : index
    %c0_161 = arith.constant 0 : index
    %566 = vector.load %arg10[%c0_160, %c0_161] : memref<1x32xf32, #tpu.memory_space<vmem>>, vector<1x32xf32>
    %567 = vector.broadcast %566 : vector<1x32xf32> to vector<8x32xf32>
    %568 = arith.mulf %565, %567 : vector<8x32xf32>
    %c0_162 = arith.constant 0 : index
    %c0_163 = arith.constant 0 : index
    %569 = vector.load %arg11[%c0_162, %c0_163] : memref<1x32xf32, #tpu.memory_space<vmem>>, vector<1x32xf32>
    %570 = vector.broadcast %569 : vector<1x32xf32> to vector<8x32xf32>
    %571 = arith.addf %568, %570 : vector<8x32xf32>
    %572 = arith.truncf %571 : vector<8x32xf32> to vector<8x32xbf16>
    %c0_164 = arith.constant 0 : index
    %c0_165 = arith.constant 0 : index
    %573 = vector.load %arg12[%c0_164, %c0_165] : memref<32x64xbf16, #tpu.memory_space<vmem>>, vector<32x64xbf16>
    %cst_166 = arith.constant dense<0.000000e+00> : vector<8x64xf32>
    %574 = tpu.matmul %572, %573, %cst_166 {dimension_numbers = #tpu.dot_dimension_numbers<[1], [0], [0], [1], [0, 0, 1, 1], [], []>} : vector<8x32xbf16>, vector<32x64xbf16>, vector<8x64xf32> -> vector<8x64xf32>
    %c0_167 = arith.constant 0 : index
    %c0_168 = arith.constant 0 : index
    %575 = vector.load %arg13[%c0_167, %c0_168] : memref<1x64xf32, #tpu.memory_space<vmem>>, vector<1x64xf32>
    %576 = vector.broadcast %575 : vector<1x64xf32> to vector<8x64xf32>
    %577 = arith.addf %574, %576 : vector<8x64xf32>
    %c0_169 = arith.constant 0 : index
    %c0_170 = arith.constant 0 : index
    %578 = vector.load %arg14[%c0_169, %c0_170] : memref<1x64xf32, #tpu.memory_space<vmem>>, vector<1x64xf32>
    %579 = vector.broadcast %578 : vector<1x64xf32> to vector<8x64xf32>
    %580 = arith.mulf %577, %579 : vector<8x64xf32>
    %c0_171 = arith.constant 0 : index
    %c0_172 = arith.constant 0 : index
    %581 = vector.load %arg15[%c0_171, %c0_172] : memref<1x64xf32, #tpu.memory_space<vmem>>, vector<1x64xf32>
    %582 = vector.broadcast %581 : vector<1x64xf32> to vector<8x64xf32>
    %583 = arith.addf %580, %582 : vector<8x64xf32>
    %cst_173 = arith.constant 0.000000e+00 : f32
    %584 = vector.broadcast %cst_173 : f32 to vector<8x64xf32>
    %585 = arith.maximumf %583, %584 : vector<8x64xf32>
    %586 = arith.truncf %585 : vector<8x64xf32> to vector<8x64xbf16>
    %c0_174 = arith.constant 0 : index
    %c0_175 = arith.constant 0 : index
    %587 = vector.load %arg16[%c0_174, %c0_175] : memref<64x32xbf16, #tpu.memory_space<vmem>>, vector<64x32xbf16>
    %cst_176 = arith.constant dense<0.000000e+00> : vector<8x32xf32>
    %588 = tpu.matmul %586, %587, %cst_176 {dimension_numbers = #tpu.dot_dimension_numbers<[1], [0], [0], [1], [0, 0, 1, 1], [], []>} : vector<8x64xbf16>, vector<64x32xbf16>, vector<8x32xf32> -> vector<8x32xf32>
    %c0_177 = arith.constant 0 : index
    %c0_178 = arith.constant 0 : index
    %589 = vector.load %arg17[%c0_177, %c0_178] : memref<1x32xf32, #tpu.memory_space<vmem>>, vector<1x32xf32>
    %590 = vector.broadcast %589 : vector<1x32xf32> to vector<8x32xf32>
    %591 = arith.addf %588, %590 : vector<8x32xf32>
    %c0_179 = arith.constant 0 : index
    %c0_180 = arith.constant 0 : index
    %592 = vector.load %arg18[%c0_179, %c0_180] : memref<1x32xf32, #tpu.memory_space<vmem>>, vector<1x32xf32>
    %593 = vector.broadcast %592 : vector<1x32xf32> to vector<8x32xf32>
    %594 = arith.mulf %591, %593 : vector<8x32xf32>
    %c0_181 = arith.constant 0 : index
    %c0_182 = arith.constant 0 : index
    %595 = vector.load %arg19[%c0_181, %c0_182] : memref<1x32xf32, #tpu.memory_space<vmem>>, vector<1x32xf32>
    %596 = vector.broadcast %595 : vector<1x32xf32> to vector<8x32xf32>
    %597 = arith.addf %594, %596 : vector<8x32xf32>
    %cst_183 = arith.constant 0.000000e+00 : f32
    %598 = vector.broadcast %cst_183 : f32 to vector<8x32xf32>
    %599 = arith.maximumf %597, %598 : vector<8x32xf32>
    %600 = arith.truncf %599 : vector<8x32xf32> to vector<8x32xbf16>
    %c0_184 = arith.constant 0 : index
    %c0_185 = arith.constant 0 : index
    %601 = vector.load %arg20[%c0_184, %c0_185] : memref<32x16xbf16, #tpu.memory_space<vmem>>, vector<32x16xbf16>
    %cst_186 = arith.constant dense<0.000000e+00> : vector<8x16xf32>
    %602 = tpu.matmul %600, %601, %cst_186 {dimension_numbers = #tpu.dot_dimension_numbers<[1], [0], [0], [1], [0, 0, 1, 1], [], []>} : vector<8x32xbf16>, vector<32x16xbf16>, vector<8x16xf32> -> vector<8x16xf32>
    %c0_187 = arith.constant 0 : index
    %c0_188 = arith.constant 0 : index
    %603 = vector.load %arg21[%c0_187, %c0_188] : memref<1x16xf32, #tpu.memory_space<vmem>>, vector<1x16xf32>
    %604 = vector.broadcast %603 : vector<1x16xf32> to vector<8x16xf32>
    %605 = arith.addf %602, %604 : vector<8x16xf32>
    %c0_189 = arith.constant 0 : index
    %c0_190 = arith.constant 0 : index
    %606 = vector.load %arg22[%c0_189, %c0_190] : memref<1x16xf32, #tpu.memory_space<vmem>>, vector<1x16xf32>
    %607 = vector.broadcast %606 : vector<1x16xf32> to vector<8x16xf32>
    %608 = arith.mulf %605, %607 : vector<8x16xf32>
    %c0_191 = arith.constant 0 : index
    %c0_192 = arith.constant 0 : index
    %609 = vector.load %arg23[%c0_191, %c0_192] : memref<1x16xf32, #tpu.memory_space<vmem>>, vector<1x16xf32>
    %610 = vector.broadcast %609 : vector<1x16xf32> to vector<8x16xf32>
    %611 = arith.addf %608, %610 : vector<8x16xf32>
    %cst_193 = arith.constant 0.000000e+00 : f32
    %612 = vector.broadcast %cst_193 : f32 to vector<8x16xf32>
    %613 = arith.maximumf %611, %612 : vector<8x16xf32>
    %614 = arith.truncf %613 : vector<8x16xf32> to vector<8x16xbf16>
    %c0_194 = arith.constant 0 : index
    %c0_195 = arith.constant 0 : index
    %615 = vector.load %arg24[%c0_194, %c0_195] : memref<16x1xbf16, #tpu.memory_space<vmem>>, vector<16x1xbf16>
    %cst_196 = arith.constant dense<0.000000e+00> : vector<8x1xf32>
    %616 = tpu.matmul %614, %615, %cst_196 {dimension_numbers = #tpu.dot_dimension_numbers<[1], [0], [0], [1], [0, 0, 1, 1], [], []>} : vector<8x16xbf16>, vector<16x1xbf16>, vector<8x1xf32> -> vector<8x1xf32>
    %c0_197 = arith.constant 0 : index
    %c0_198 = arith.constant 0 : index
    %617 = vector.load %arg25[%c0_197, %c0_198] : memref<1x1xf32, #tpu.memory_space<vmem>>, vector<1x1xf32>
    %618 = vector.broadcast %617 : vector<1x1xf32> to vector<8x1xf32>
    %619 = arith.addf %616, %618 : vector<8x1xf32>
    %c0_199 = arith.constant 0 : index
    %c0_200 = arith.constant 0 : index
    %620 = vector.load %arg26[%c0_199, %c0_200] : memref<8x1xf32, #tpu.memory_space<vmem>>, vector<8x1xf32>
    tpu.vector_store %arg26[%c0_199, %c0_200], %619 {strides = array<i32>} : memref<8x1xf32, #tpu.memory_space<vmem>>, vector<8x1xf32>,
    return
  }
}

</mosaic_0001>

<bundles_post_ra>
// kernel: imdb_lstm_forward.1
= control target key start
LH: loop header
LB: loop body
LE: loop exit
PB: predicated region body
PF: predicated region fallthrough
CT: control target
= control target key end

     0   :  { %s4940_s0 = inlined_call_operand.vmem [shape: bf16[64,32], index: 0, kind: input, shape index: {}]   ;;  %s4941_s1 = inlined_call_operand.vmem [shape: bf16[32,128], index: 1, kind: input, shape index: {}]   ;;  %s4942_s2 = inlined_call_operand.vmem [shape: f32[32,128], index: 2, kind: input, shape index: {}]   ;;  %s4943_s3 = inlined_call_operand.hbm [shape: f32[1,128], index: 3, kind: input, shape index: {}]   ;;  %s4944_s4 = inlined_call_operand.vmem [shape: bf16[32,128], index: 4, kind: input, shape index: {}]   ;;  %s4945_s5 = inlined_call_operand.vmem [shape: f32[32,128], index: 5, kind: input, shape index: {}]   ;;  %s4946_s6 = inlined_call_operand.vmem [shape: f32[1,128], index: 6, kind: input, shape index: {}]   ;;  %s4947_s7 = inlined_call_operand.vmem [shape: bf16[32,128], index: 7, kind: input, shape index: {}]   ;;  %s4948_s8 = inlined_call_operand.vmem [shape: f32[32,128], index: 8, kind: input, shape index: {}]   ;;  %s4949_s9 = inlined_call_operand.vmem [shape: f32[1,128], index: 9, kind: input, shape index: {}]   ;;  %s4950_s10 = inlined_call_operand.vmem [shape: f32[1,32], index: 10, kind: input, shape index: {}]   ;;  %s4951_s11 = inlined_call_operand.vmem [shape: f32[1,32], index: 11, kind: input, shape index: {}]   ;;  %s4952_s12 = inlined_call_operand.vmem [shape: bf16[32,64], index: 12, kind: input, shape index: {}]   ;;  %s4953_s13 = inlined_call_operand.vmem [shape: f32[1,64], index: 13, kind: input, shape index: {}]   ;;  %s4954_s14 = inlined_call_operand.vmem [shape: f32[1,64], index: 14, kind: input, shape index: {}]   ;;  %s4955_s15 = inlined_call_operand.vmem [shape: f32[1,64], index: 15, kind: input, shape index: {}]   ;;  %s4956_s16 = inlined_call_operand.vmem [shape: bf16[64,32], index: 16, kind: input, shape index: {}]   ;;  %s4957_s17 = inlined_call_operand.vmem [shape: f32[1,32], index: 17, kind: input, shape index: {}]   ;;  %s4958_s18 = inlined_call_operand.vmem [shape: f32[1,32], index: 18, kind: input, shape index: {}]   ;;  %s4959_s19 = inlined_call_operand.vmem [shape: f32[1,32], index: 19, kind: input, shape index: {}]   ;;  %s4960_s20 = inlined_call_operand.vmem [shape: bf16[32,16], index: 20, kind: input, shape index: {}]   ;;  %s4961_s21 = inlined_call_operand.vmem [shape: f32[1,16], index: 21, kind: input, shape index: {}]   ;;  %s4962_s22 = inlined_call_operand.vmem [shape: f32[1,16], index: 22, kind: input, shape index: {}]   ;;  %s4963_s23 = inlined_call_operand.vmem [shape: f32[1,16], index: 23, kind: input, shape index: {}]   ;;  %s4964_s24 = inlined_call_operand.vmem [shape: bf16[16,1], index: 24, kind: input, shape index: {}]   ;;  %s4965_s25 = inlined_call_operand.<no memory space> [shape: f32[1,1], index: 25, kind: input, shape index: {}]   ;;  %s4966_s26 = inlined_call_operand.vmem [shape: f32[8,1], index: 26, kind: output, shape index: {}]  }
   0x1   :  { %4975 = sst [smem:[#allocation9_spill]] %s4940_s0  ;;  %v31_v0 = vstv %s4965_s25 }
   0x2   :  { %4976 = sst [smem:[#allocation10_spill]] %s4941_s1  ;;  %32 = vst [vmem:[#allocation5] sm:$0x1] %v31_v0 }
   0x3   :  { %4977 = sst [smem:[#allocation11_spill]] %s4942_s2 }
   0x4   :  { %4978 = sst [smem:[#allocation12_spill]] %s4943_s3 }
   0x5   :  { %4979 = sst [smem:[#allocation13_spill]] %s4944_s4 }
   0x6   :  { %4980 = sst [smem:[#allocation14_spill]] %s4945_s5 }
   0x7   :  { %4981 = sst [smem:[#allocation15_spill]] %s4946_s6 }
   0x8   :  { %4982 = sst [smem:[#allocation16_spill]] %s4947_s7 }
   0x9   :  { %4983 = sst [smem:[#allocation17_spill]] %s4948_s8 }
   0xa   :  { %4984 = sst [smem:[#allocation18_spill]] %s4949_s9 }
   0xb   :  { %4985 = sst [smem:[#allocation19_spill]] %s4950_s10 }
   0xc   :  { %33 = vsyncpa [#allocation7], 0  ;;  %s4138_s7 = smov [#allocation6]   ;;  %s4986_s29 = sld [smem:[#allocation12_spill]] }
   0xd   :  { %s46_s28 = sshll.u32 %s4138_s7, 4  ;;  %s47_s28 = int_to_ptr.vmem [resolvable:$true] %s46_s28 }
  0x12   :  { %s4114_s0 = scalar_lea.hbm %s4986_s29, 16 }
  0x13   :  { %p4115_p0 = scmp.ne.s32.totalorder %s4986_s29, %s4114_s0  ;;  %p4118_p1 = scmp.lt.u32.totalorder %s4114_s0, %s4986_s29 }
  0x15   :  { %p4120_p2 = pnand %p4118_p1, %p4115_p0 }
  0x17   :  { %4123 = shalt.err (!%p4120_p2)
}
  0x18   :  { %s4124_s25 = scalar_lea.vmem %s47_s28, 16  ;;  %s4128_s10 = scalar_lea.vmem %s47_s28, 32 }
  0x19   :  { %p4125_p3 = scmp.ne.s32.totalorder %s47_s28, %s4124_s25  ;;  %p4129_p4 = scmp.lt.s32.totalorder %s47_s28, %s47_s28 }
  0x1a   :  { %p4130_p5 = scmp.lt.s32.totalorder %s4128_s10, %s4124_s25 }
  0x1c   :  { %p4131_p6 = por %p4130_p5, %p4129_p4 }
  0x1e   :  { %p4132_p7 = pnand %p4131_p6, %p4125_p3 }
  0x20   :  { %4135 = shalt.err (!%p4132_p7)
}
  0x21   :  { %49 = dma.hbm_to_vmem [thread:$0]  %s4986_s29, 16, %s47_s28, [#allocation7]  }
  0x22   :  { %4136 = dma.done.wait [#allocation7], 16  }
  0x23   :  { %4137 = vsyncadd [#allocation7], 4294967280  ;;  %v4139_v1 = vmov 0.0|0.0   ;;  %vm4140_vm0 = vmmov 0   ;;  %v4141_v2 = vmov 0.0   ;;  %s4987_s7 = sld [smem:[#allocation10_spill]]  ;;  %v98_v13 = vlaneseq }
  0x24   :  { %3845 = vmatprep.subr.bf16.mxu1 %v4139_v1  ;;  %3531 = vmatprep.mubr.msk.f32.mxu1 %vm4140_vm0, %v4141_v2  ;;  %s4988_s0 = sld [smem:[#allocation11_spill]]  ;;  %vm156_vm1 = vcmask 261120   ;;  %s4989_s25 = sld [smem:[#allocation9_spill]]  ;;  %v4345_v15 = vld [vmem:[#allocation6] ss:$0 sm:$0xff]  ;;  %v4142_v22 = vmov 0.5  }
  0x25   :  { %v99_v14 = vand.u32 127, %v98_v13  ;;  %s4143_s8 = smov 64   ;;  %s4144_s4 = smov 32   ;;  %vm3077_vm5 = vcmask 523264   ;;  %vm3238_vm6 = vcmask 130048   ;;  %vm3282_vm7 = vcmask 7168  }
  0x26   :  { %s4990_s5 = sld [smem:[#allocation13_spill]]  ;;  %s4991_s27 = sld [smem:[#allocation14_spill]] }
  0x27   :  { %vm100_vm2 = vcmp.ge.s32.totalorder %v99_v14, 64  ;;  %vm101_vm3 = vcmp.lt.s32.totalorder %v99_v14, 96  ;;  %s4993_s6 = sld [smem:[#allocation16_spill]]  ;;  %s4996_s3 = sld [smem:[#allocation19_spill]] }
  0x28   :  { %vm102_vm4 = vmand %vm100_vm2, %vm101_vm3 }
  0x29   :  { %v3997_v3 = vld [vmem:[%s4987_s7] sm:$0xff]   ;;  %v3998_v7 = vld [vmem:[%s4987_s7 + $0x8] sm:$0xff]   ;;  %v4352_v23 = vsel %vm102_vm4, 1.0, %v4142_v22  ;;  %v4355_v28 = vsel %vm102_vm4, 0.0, %v4142_v22  ;;  %s4145_s7 = smov 96  }
  0x2a   :  { %v242_v4 = vld [vmem:[%s4988_s0] sm:$0xff]  ;;  %v243_v5 = vld [vmem:[%s4988_s0 + $0x8] sm:$0xff]  ;;  %3511 = vmatprep.subr.bf16.mxu0 %v3997_v3  ;;  %v244_v9 = vld [vmem:[%s4988_s0 + $0x10] sm:$0xff] }
  0x2b   :  { %v4308_v6 = vpack.c.bf16 %v243_v5, %v242_v4  ;;  %3512 = vmatpush3.bf16.msra.mxu0 %v3997_v3  ;;  %v3999_v8 = vld [vmem:[%s4989_s25] sm:$0xff]   ;;  %v245_v10 = vld [vmem:[%s4988_s0 + $0x18] sm:$0xff]  ;;  %v4000_v12 = vld [vmem:[%s4989_s25 + $0x8] sm:$0xff]   ;;  %s4994_s0 = sld [smem:[#allocation17_spill]] }
  0x2c   :  { %3513 = vmatprep.subr.bf16.mxu0 %v3998_v7  ;;  %3515 = vmatprep.mubr.msk.bf16.mxu0 %vm156_vm1, %v3999_v8  ;;  %v4325_v11 = vpack.c.bf16 %v245_v10, %v244_v9  ;;  %v4001_v53 = vld [vmem:[%s4989_s25 + $0x10] sm:$0xff]   ;;  %v4002_v54 = vld [vmem:[%s4989_s25 + $0x18] sm:$0xff]  }
  0x2d   :  { %3847 = vmatpush3.bf16.msra.mxu1 %v4308_v6 }
  0x2e   :  { %3848 = vmatprep.subr.bf16.mxu1 %v4139_v1 }
  0x2f   :  { %3514 = vmatpush3.bf16.msra.mxu0 %v3998_v7 }
  0x30   :  { %3857 = vmatprep.subr.bf16.mxu0 %v4139_v1 }
  0x31   :  { %3850 = vmatpush3.bf16.msra.mxu1 %v4325_v11 }
  0x32   :  { %3851 = vmatprep.subr.bf16.mxu1 %v4139_v1  ;;  %3516 = vmatmul.mubr.msk.bf16.vlgmr.msra.gmra.mrb[0].mxu0 %vm156_vm1, %v4000_v12 }
  0x33   :  { %3859 = vmatpush3.bf16.msra.mxu0 %v4308_v6  ;;  %3519 = vmatprep.mubr.msk.bf16.mxu0 %vm156_vm1, %v4001_v53 }
  0x34   :  { %3532 = vmatmul.mubr.f32.vlgmr.msra.gmra.mrb[0].mxu1 %v4141_v2  ;;  %3860 = vmatprep.subr.bf16.mxu0 %v4139_v1 }
  0x35   :  { %3853 = vmatpush3.bf16.msra.mxu1 %v4308_v6  ;;  %3542 = vmatprep.mubr.msk.f32.mxu1 %vm4140_vm0, %v4141_v2 }
  0x36   :  { %3854 = vmatprep.subr.bf16.mxu1 %v4139_v1 }
  0x37   :  { %3862 = vmatpush3.bf16.msra.mxu0 %v4325_v11 }
  0x38   :  { %3869 = vmatprep.subr.bf16.mxu0 %v4139_v1 }
  0x39   :  { %3856 = vmatpush3.bf16.msra.mxu1 %v4325_v11 }
  0x3a   :  { %3863 = vmatprep.subr.bf16.mxu1 %v4139_v1  ;;  %3520 = vmatmul.mubr.msk.bf16.gmra.mrb[4].mxu0 %vm156_vm1, %v4002_v54 }
  0x3b   :  { %3553 = vmatprep.mubr.msk.f32.mxu0 %vm4140_vm0, %v4141_v2 }
 0x105   :  { %v4347_v16 = vpop.f32.mrb[0].mxu0 }
 0x106   :  { %v203_v17 = vpop.f32.mrb[1].mxu0  ;;  %v212_v63 = vadd.f32 %v4347_v16, %v4345_v15 }
 0x107   :  { %v316_v18 = vpop.f32.mrb[0].mxu1  ;;  %v204_v19 = vadd.f32 %v4345_v15, %v203_v17  ;;  %v4350_v20 = vpop.f32.mrb[2].mxu0 }
 0x108   :  { %v3533_v21 = vpop.f32.mrb[1].mxu1  ;;  %v206_v24 = vpop.f32.mrb[3].mxu0  ;;  %v215_v22 = vadd.f32 %v4350_v20, %v4345_v15 }
 0x109   :  { %v320_v25 = vadd.f32 %v316_v18, %v204_v19  ;;  %v207_v40 = vadd.f32 %v4345_v15, %v206_v24 }
 0x10b   :  { %v321_v26 = vmul.f32 %v320_v25, %v4352_v23 }
 0x10d   :  { %4016 = vtanh.f32 %v321_v26  ;;  %v4389_v58 = vpop.f32.mrb[4].mxu0 }
 0x10e   :  { %v4391_v59 = vpop.f32.mrb[5].mxu0 }
 0x10f   :  { %v4393_v60 = vpop.f32.mrb[6].mxu0 }
 0x110   :  { %v4395_v61 = vpop.f32.mrb[7].mxu0 }
 0x117   :  { %v4017_v27 = vpop.eup %4016 }
 0x118   :  { %v323_v29 = vmul.f32 %v4017_v27, %v4352_v23 }
 0x11a   :  { %v324_v30 = vadd.f32 %v323_v29, %v4355_v28 }
 0x11c   :  { %327 = vrot.lane.b32.xlu0 %v324_v30, %s4143_s8  ;;  %v325_v33 = vmul.f32 0.0, %v324_v30 }
 0x18e   :  { %v328_v31 = vpop.permute.xlu0 %327 }
 0x18f   :  { %v330_v32 = vmul.f32 %v328_v31, %v324_v30 }
 0x191   :  { %332 = vrot.lane.b32.xlu0 %v330_v32, %s4144_s4 }
 0x203   :  { %v333_v34 = vpop.permute.xlu0 %332 }
 0x204   :  { %v335_v35 = vadd.f32 %v333_v34, %v325_v33 }
 0x206   :  { %4018 = vtanh.f32 %v335_v35 }
 0x210   :  { %v4019_v36 = vpop.eup %4018 }
 0x211   :  { %338 = vrot.lane.b32.xlu1 %v4019_v36, %s4143_s8 }
 0x283   :  { %v339_v37 = vpop.permute.xlu1 %338 }
 0x284   :  { %v341_v38 = vmul.f32 %v339_v37, %v324_v30 }
 0x286   :  { %343 = vrot.lane.b32.xlu1 %v341_v38, %s4144_s4 }
 0x2f8   :  { %v344_v39 = vpop.permute.xlu1 %343 }
 0x2f9   :  { %346 = vst.msk [vmem:[#allocation3] sm:$0xff] %vm156_vm1, %v344_v39  ;;  %3543 = vmatmul.mubr.msk.f32.vlgmr.msra.gmra.mrb[2].mxu1 %vm156_vm1, %v344_v39 }
 0x2fa   :  { %3865 = vmatpush3.bf16.msra.mxu1 %v4308_v6  ;;  %3564 = vmatprep.mubr.msk.f32.mxu1 %vm4140_vm0, %v4141_v2 }
 0x2fb   :  { %3866 = vmatprep.subr.bf16.mxu1 %v4139_v1 }
 0x2fe   :  { %3868 = vmatpush3.bf16.msra.mxu1 %v4325_v11 }
 0x2ff   :  { %3875 = vmatprep.subr.bf16.mxu1 %v4139_v1 }
 0x3cc   :  { %v417_v41 = vpop.f32.mrb[2].mxu1 }
 0x3cd   :  { %v421_v42 = vadd.f32 %v417_v41, %v207_v40  ;;  %v3544_v43 = vpop.f32.mrb[3].mxu1  ;;  %v220_v40 = vadd.f32 %v4345_v15, %v4391_v59 }
 0x3cf   :  { %v422_v44 = vmul.f32 %v421_v42, %v4352_v23 }
 0x3d1   :  { %4020 = vtanh.f32 %v422_v44 }
 0x3db   :  { %v4021_v45 = vpop.eup %4020 }
 0x3dc   :  { %v424_v46 = vmul.f32 %v4021_v45, %v4352_v23 }
 0x3de   :  { %v425_v47 = vadd.f32 %v424_v46, %v4355_v28 }
 0x3e0   :  { %428 = vrot.lane.b32.xlu0 %v425_v47, %s4143_s8  ;;  %v426_v50 = vmul.f32 %v425_v47, %v335_v35 }
 0x452   :  { %v429_v48 = vpop.permute.xlu0 %428 }
 0x453   :  { %v431_v49 = vmul.f32 %v429_v48, %v425_v47 }
 0x455   :  { %433 = vrot.lane.b32.xlu1 %v431_v49, %s4144_s4 }
 0x4c7   :  { %v434_v51 = vpop.permute.xlu1 %433 }
 0x4c8   :  { %v436_v52 = vadd.f32 %v434_v51, %v426_v50 }
 0x4ca   :  { %4022 = vtanh.f32 %v436_v52 }
 0x4d4   :  { %v4023_v55 = vpop.eup %4022 }
 0x4d5   :  { %439 = vrot.lane.b32.xlu0 %v4023_v55, %s4143_s8 }
 0x547   :  { %v440_v56 = vpop.permute.xlu0 %439 }
 0x548   :  { %v442_v57 = vmul.f32 %v440_v56, %v425_v47 }
 0x54a   :  { %444 = vrot.lane.b32.xlu1 %v442_v57, %s4144_s4  ;;  %v223_v57 = vadd.f32 %v4345_v15, %v4395_v61 }
 0x5bc   :  { %v445_v62 = vpop.permute.xlu1 %444 }
 0x5bd   :  { %448 = vst.msk [vmem:[#allocation3 + $0x8] sm:$0xff] %vm156_vm1, %v445_v62  ;;  %3554 = vmatmul.mubr.msk.f32.vlgmr.msra.gmra.mrb[8].mxu0 %vm156_vm1, %v445_v62 }
 0x5be   :  { %3871 = vmatpush3.bf16.msra.mxu0 %v4308_v6  ;;  %3575 = vmatprep.mubr.msk.f32.mxu0 %vm4140_vm0, %v4141_v2 }
 0x5bf   :  { %3872 = vmatprep.subr.bf16.mxu0 %v4139_v1 }
 0x5c2   :  { %3874 = vmatpush3.bf16.msra.mxu0 %v4325_v11 }
 0x5c3   :  { %3881 = vmatprep.subr.bf16.mxu0 %v4139_v1 }
 0x690   :  { %v519_v0 = vpop.f32.mrb[8].mxu0 }
 0x691   :  { %v523_v3 = vadd.f32 %v519_v0, %v212_v63  ;;  %v3555_v4 = vpop.f32.mrb[9].mxu0 }
 0x693   :  { %v524_v5 = vmul.f32 %v523_v3, %v4352_v23 }
 0x695   :  { %4024 = vtanh.f32 %v524_v5 }
 0x69f   :  { %v4025_v7 = vpop.eup %4024 }
 0x6a0   :  { %v526_v8 = vmul.f32 %v4025_v7, %v4352_v23 }
 0x6a2   :  { %v527_v9 = vadd.f32 %v526_v8, %v4355_v28 }
 0x6a4   :  { %530 = vrot.lane.b32.xlu0 %v527_v9, %s4143_s8  ;;  %v528_v13 = vmul.f32 %v527_v9, %v436_v52 }
 0x716   :  { %v531_v10 = vpop.permute.xlu0 %530 }
 0x717   :  { %v533_v12 = vmul.f32 %v531_v10, %v527_v9 }
 0x719   :  { %535 = vrot.lane.b32.xlu1 %v533_v12, %s4144_s4 }
 0x78b   :  { %v536_v14 = vpop.permute.xlu1 %535 }
 0x78c   :  { %v538_v16 = vadd.f32 %v536_v14, %v528_v13  ;;  %v1062_v14 = vld [vmem:[#allocation3 + $0x8] sm:$0xff] }
 0x78e   :  { %4026 = vtanh.f32 %v538_v16 }
 0x798   :  { %v4027_v17 = vpop.eup %4026 }
 0x799   :  { %541 = vrot.lane.b32.xlu0 %v4027_v17, %s4143_s8  ;;  %v4004_v17 = vld [vmem:[%s4990_s5 + $0x8] sm:$0xff]  }
 0x80b   :  { %v542_v18 = vpop.permute.xlu0 %541 }
 0x80c   :  { %v544_v19 = vmul.f32 %v542_v18, %v527_v9  ;;  %v4003_v9 = vld [vmem:[%s4990_s5] sm:$0xff]   ;;  %s4992_s5 = sld [smem:[#allocation15_spill]] }
 0x80e   :  { %546 = vrot.lane.b32.xlu1 %v544_v19, %s4144_s4 }
 0x880   :  { %v547_v21 = vpop.permute.xlu1 %546 }
 0x881   :  { %550 = vst.msk [vmem:[#allocation3 + $0x10] sm:$0xff] %vm156_vm1, %v547_v21  ;;  %3565 = vmatmul.mubr.msk.f32.vlgmr.msra.gmra.mrb[4].mxu1 %vm156_vm1, %v547_v21 }
 0x882   :  { %3877 = vmatpush3.bf16.msra.mxu1 %v4308_v6  ;;  %3586 = vmatprep.mubr.msk.f32.mxu1 %vm4140_vm0, %v4141_v2 }
 0x883   :  { %3878 = vmatprep.subr.bf16.mxu1 %v4139_v1 }
 0x886   :  { %3880 = vmatpush3.bf16.msra.mxu1 %v4325_v11 }
 0x887   :  { %3887 = vmatprep.subr.bf16.mxu1 %v4139_v1 }
 0x954   :  { %v621_v24 = vpop.f32.mrb[4].mxu1 }
 0x955   :  { %v625_v25 = vadd.f32 %v621_v24, %v215_v22  ;;  %v3566_v26 = vpop.f32.mrb[5].mxu1  ;;  %v1063_v22 = vld [vmem:[#allocation3 + $0x10] sm:$0xff] }
 0x957   :  { %v626_v27 = vmul.f32 %v625_v25, %v4352_v23 }
 0x959   :  { %4028 = vtanh.f32 %v626_v27 }
 0x963   :  { %v4029_v29 = vpop.eup %4028 }
 0x964   :  { %v628_v30 = vmul.f32 %v4029_v29, %v4352_v23  ;;  %v228_v29 = vadd.f32 %v4389_v58, %v4345_v15 }
 0x966   :  { %v629_v31 = vadd.f32 %v628_v30, %v4355_v28 }
 0x968   :  { %632 = vrot.lane.b32.xlu0 %v629_v31, %s4143_s8  ;;  %v630_v34 = vmul.f32 %v629_v31, %v538_v16  ;;  %v1061_v16 = vld [vmem:[#allocation3] sm:$0xff] }
 0x969   :  { %v1069_v19 = vpack.c.bf16 %v1062_v14, %v1061_v16 }
 0x9da   :  { %v633_v32 = vpop.permute.xlu0 %632 }
 0x9db   :  { %v635_v33 = vmul.f32 %v633_v32, %v629_v31 }
 0x9dd   :  { %637 = vrot.lane.b32.xlu1 %v635_v33, %s4144_s4 }
 0xa4f   :  { %v638_v35 = vpop.permute.xlu1 %637 }
 0xa50   :  { %v640_v20 = vadd.f32 %v638_v35, %v630_v34 }
 0xa52   :  { %4030 = vtanh.f32 %v640_v20 }
 0xa5c   :  { %v4031_v36 = vpop.eup %4030 }
 0xa5d   :  { %643 = vrot.lane.b32.xlu0 %v4031_v36, %s4143_s8 }
 0xacf   :  { %v644_v37 = vpop.permute.xlu0 %643 }
 0xad0   :  { %v646_v38 = vmul.f32 %v644_v37, %v629_v31 }
 0xad2   :  { %648 = vrot.lane.b32.xlu1 %v646_v38, %s4144_s4 }
 0xb44   :  { %v649_v39 = vpop.permute.xlu1 %648 }
 0xb45   :  { %652 = vst.msk [vmem:[#allocation3 + $0x18] sm:$0xff] %vm156_vm1, %v649_v39  ;;  %3576 = vmatmul.mubr.msk.f32.vlgmr.msra.gmra.mrb[10].mxu0 %vm156_vm1, %v649_v39 }
 0xb46   :  { %3883 = vmatpush3.bf16.msra.mxu0 %v4308_v6  ;;  %3597 = vmatprep.mubr.msk.f32.mxu0 %vm4140_vm0, %v4141_v2 }
 0xb47   :  { %3884 = vmatprep.subr.bf16.mxu0 %v4139_v1 }
 0xb4a   :  { %3886 = vmatpush3.bf16.msra.mxu0 %v4325_v11 }
 0xb4b   :  { %3611 = vmatprep.subr.bf16.mxu0 %v4003_v9 }
 0xb4c   :  { %v1064_v21 = vld [vmem:[#allocation3 + $0x18] sm:$0xff] }
 0xb4d   :  { %v1070_v24 = vpack.c.bf16 %v1064_v21, %v1063_v22 }
 0xc18   :  { %v723_v41 = vpop.f32.mrb[10].mxu0 }
 0xc19   :  { %v727_v42 = vadd.f32 %v723_v41, %v220_v40  ;;  %v3577_v43 = vpop.f32.mrb[11].mxu0 }
 0xc1b   :  { %v728_v44 = vmul.f32 %v727_v42, %v4352_v23 }
 0xc1d   :  { %4032 = vtanh.f32 %v728_v44 }
 0xc27   :  { %v4033_v45 = vpop.eup %4032 }
 0xc28   :  { %v730_v46 = vmul.f32 %v4033_v45, %v4352_v23  ;;  %v1181_v45 = vld [vmem:[%s4991_s27] sm:$0xff] }
 0xc2a   :  { %v731_v47 = vadd.f32 %v730_v46, %v4355_v28  ;;  %v1182_v46 = vld [vmem:[%s4991_s27 + $0x8] sm:$0xff] }
 0xc2c   :  { %734 = vrot.lane.b32.xlu0 %v731_v47, %s4143_s8  ;;  %v732_v50 = vmul.f32 %v731_v47, %v640_v20 }
 0xc9e   :  { %v735_v48 = vpop.permute.xlu0 %734 }
 0xc9f   :  { %v737_v49 = vmul.f32 %v735_v48, %v731_v47  ;;  %v1183_v48 = vld [vmem:[%s4991_s27 + $0x10] sm:$0xff] }
 0xca1   :  { %739 = vrot.lane.b32.xlu1 %v737_v49, %s4144_s4  ;;  %v1184_v49 = vld [vmem:[%s4991_s27 + $0x18] sm:$0xff] }
 0xd13   :  { %v740_v51 = vpop.permute.xlu1 %739 }
 0xd14   :  { %v742_v52 = vadd.f32 %v740_v51, %v732_v50  ;;  %v4509_v50 = vpack.c.bf16 %v1184_v49, %v1183_v48 }
 0xd16   :  { %4034 = vtanh.f32 %v742_v52 }
 0xd20   :  { %v4035_v53 = vpop.eup %4034 }
 0xd21   :  { %745 = vrot.lane.b32.xlu0 %v4035_v53, %s4143_s8 }
 0xd93   :  { %v746_v54 = vpop.permute.xlu0 %745 }
 0xd94   :  { %v748_v55 = vmul.f32 %v746_v54, %v731_v47  ;;  %v4499_v47 = vpack.c.bf16 %v1182_v46, %v1181_v45  ;;  %v231_v54 = vadd.f32 %v4393_v60, %v4345_v15 }
 0xd96   :  { %750 = vrot.lane.b32.xlu1 %v748_v55, %s4144_s4 }
 0xe08   :  { %v751_v56 = vpop.permute.xlu1 %750 }
 0xe09   :  { %754 = vst.msk [vmem:[#allocation3 + $0x20] sm:$0xff] %vm156_vm1, %v751_v56  ;;  %3587 = vmatmul.mubr.msk.f32.vlgmr.msra.gmra.mrb[6].mxu1 %vm156_vm1, %v751_v56 }
 0xe0a   :  { %3889 = vmatpush3.bf16.msra.mxu1 %v4308_v6  ;;  %3608 = vmatprep.mubr.msk.f32.mxu1 %vm4140_vm0, %v4141_v2 }
 0xe0b   :  { %3890 = vmatprep.subr.bf16.mxu1 %v4139_v1 }
 0xe0e   :  { %3892 = vmatpush3.bf16.msra.mxu1 %v4325_v11 }
 0xe0f   :  { %3893 = vmatprep.subr.bf16.mxu1 %v4139_v1 }
 0xe10   :  { %v1065_v25 = vld [vmem:[#allocation3 + $0x20] sm:$0xff] }
 0xedc   :  { %v825_v59 = vpop.f32.mrb[6].mxu1 }
 0xedd   :  { %v829_v62 = vadd.f32 %v825_v59, %v223_v57  ;;  %v3588_v63 = vpop.f32.mrb[7].mxu1  ;;  %v4534_v59 = vld [vmem:[%s4992_s5] ss:$0 sm:$0xff] }
 0xedf   :  { %v830_v0 = vmul.f32 %v829_v62, %v4352_v23 }
 0xee1   :  { %4036 = vtanh.f32 %v830_v0 }
 0xeeb   :  { %v4037_v3 = vpop.eup %4036 }
 0xeec   :  { %v832_v6 = vmul.f32 %v4037_v3, %v4352_v23 }
 0xeee   :  { %v833_v4 = vadd.f32 %v832_v6, %v4355_v28 }
 0xef0   :  { %836 = vrot.lane.b32.xlu0 %v833_v4, %s4143_s8  ;;  %v834_v7 = vmul.f32 %v833_v4, %v742_v52 }
 0xf62   :  { %v837_v5 = vpop.permute.xlu0 %836 }
 0xf63   :  { %v839_v11 = vmul.f32 %v837_v5, %v833_v4 }
 0xf65   :  { %841 = vrot.lane.b32.xlu1 %v839_v11, %s4144_s4 }
 0xfd7   :  { %v842_v8 = vpop.permute.xlu1 %841 }
 0xfd8   :  { %v844_v61 = vadd.f32 %v842_v8, %v834_v7 }
 0xfda   :  { %4038 = vtanh.f32 %v844_v61 }
 0xfe4   :  { %v4039_v10 = vpop.eup %4038 }
 0xfe5   :  { %847 = vrot.lane.b32.xlu0 %v4039_v10, %s4143_s8 }
0x1057   :  { %v848_v12 = vpop.permute.xlu0 %847 }
0x1058   :  { %v850_v13 = vmul.f32 %v848_v12, %v833_v4 }
0x105a   :  { %852 = vrot.lane.b32.xlu1 %v850_v13, %s4144_s4 }
0x10cc   :  { %v853_v18 = vpop.permute.xlu1 %852 }
0x10cd   :  { %856 = vst.msk [vmem:[#allocation3 + $0x28] sm:$0xff] %vm156_vm1, %v853_v18  ;;  %3598 = vmatmul.mubr.msk.f32.vlgmr.msra.gmra.mrb[12].mxu0 %vm156_vm1, %v853_v18 }
0x10ce   :  { %3612 = vmatpush3.bf16.msra.mxu0 %v4003_v9  ;;  %3615 = vmatprep.mubr.msk.bf16.mxu0 %vm156_vm1, %v1069_v19 }
0x10cf   :  { %3613 = vmatprep.subr.bf16.mxu0 %v4004_v17 }
0x10d2   :  { %3614 = vmatpush3.bf16.msra.mxu0 %v4004_v17 }
0x10d3   :  { %3905 = vmatprep.subr.bf16.mxu0 %v4139_v1 }
0x10d4   :  { %v1066_v26 = vld [vmem:[#allocation3 + $0x28] sm:$0xff] }
0x10d5   :  { %3616 = vmatmul.mubr.msk.bf16.vlgmr.msra.gmra.mrb[16].mxu0 %vm156_vm1, %v1070_v24  ;;  %v1071_v27 = vpack.c.bf16 %v1066_v26, %v1065_v25 }
0x10d6   :  { %3907 = vmatpush3.bf16.msra.mxu0 %v4499_v47 }
0x10d7   :  { %3619 = vmatprep.mubr.msk.bf16.mxu0 %vm156_vm1, %v1071_v27  ;;  %3908 = vmatprep.subr.bf16.mxu0 %v4139_v1 }
0x10da   :  { %3910 = vmatpush3.bf16.msra.mxu0 %v4509_v50 }
0x10db   :  { %3917 = vmatprep.subr.bf16.mxu0 %v4139_v1 }
0x11a0   :  { %v927_v30 = vpop.f32.mrb[12].mxu0 }
0x11a1   :  { %v931_v31 = vadd.f32 %v927_v30, %v228_v29  ;;  %v3599_v32 = vpop.f32.mrb[13].mxu0 }
0x11a3   :  { %v932_v33 = vmul.f32 %v931_v31, %v4352_v23 }
0x11a5   :  { %4040 = vtanh.f32 %v932_v33 }
0x11a8   :  { %v4479_v34 = vpop.f32.mrb[16].mxu0 }
0x11a9   :  { %v1142_v35 = vpop.f32.mrb[17].mxu0 }
0x11aa   :  { %v4481_v20 = vpop.f32.mrb[18].mxu0  ;;  %v1143_v62 = vadd.f32 %v4534_v59, %v1142_v35 }
0x11ab   :  { %v4483_v36 = vpop.f32.mrb[19].mxu0 }
0x11ac   :  { %v1146_v30 = vadd.f32 %v4534_v59, %v4483_v36 }
0x11af   :  { %v4041_v37 = vpop.eup %4040 }
0x11b0   :  { %v934_v38 = vmul.f32 %v4041_v37, %v4352_v23 }
0x11b2   :  { %v935_v39 = vadd.f32 %v934_v38, %v4355_v28 }
0x11b4   :  { %938 = vrot.lane.b32.xlu0 %v935_v39, %s4143_s8  ;;  %v936_v41 = vmul.f32 %v935_v39, %v844_v61 }
0x1226   :  { %v939_v58 = vpop.permute.xlu0 %938 }
0x1227   :  { %v941_v40 = vmul.f32 %v939_v58, %v935_v39 }
0x1229   :  { %943 = vrot.lane.b32.xlu1 %v941_v40, %s4144_s4 }
0x129b   :  { %v944_v42 = vpop.permute.xlu1 %943 }
0x129c   :  { %v4489_v43 = vadd.f32 %v944_v42, %v936_v41 }
0x129e   :  { %4042 = vtanh.f32 %v4489_v43 }
0x12a8   :  { %v4043_v44 = vpop.eup %4042 }
0x12a9   :  { %949 = vrot.lane.b32.xlu0 %v4043_v44, %s4143_s8 }
0x131b   :  { %v950_v51 = vpop.permute.xlu0 %949 }
0x131c   :  { %v952_v52 = vmul.f32 %v950_v51, %v935_v39 }
0x131e   :  { %954 = vrot.lane.b32.xlu1 %v952_v52, %s4144_s4 }
0x1390   :  { %v955_v53 = vpop.permute.xlu1 %954 }
0x1391   :  { %958 = vst.msk [vmem:[#allocation3 + $0x30] sm:$0xff] %vm156_vm1, %v955_v53  ;;  %3609 = vmatmul.mubr.msk.f32.vlgmr.msra.gmra.mrb[8].mxu1 %vm156_vm1, %v955_v53 }
0x1392   :  { %3895 = vmatpush3.bf16.msra.mxu1 %v4499_v47  ;;  %3631 = vmatprep.mubr.msk.f32.mxu1 %vm4140_vm0, %v4141_v2 }
0x1393   :  { %3896 = vmatprep.subr.bf16.mxu1 %v4139_v1 }
0x1396   :  { %3898 = vmatpush3.bf16.msra.mxu1 %v4509_v50 }
0x1397   :  { %3899 = vmatprep.subr.bf16.mxu1 %v4139_v1 }
0x1398   :  { %v1067_v40 = vld [vmem:[#allocation3 + $0x30] sm:$0xff] }
0x1399   :  { %3632 = vmatmul.mubr.f32.vlgmr.msra.gmra.mrb[10].mxu1 %v4141_v2 }
0x139a   :  { %3901 = vmatpush3.bf16.msra.mxu1 %v4499_v47  ;;  %3642 = vmatprep.mubr.msk.f32.mxu1 %vm4140_vm0, %v4141_v2 }
0x139b   :  { %3902 = vmatprep.subr.bf16.mxu1 %v4139_v1 }
0x139e   :  { %3904 = vmatpush3.bf16.msra.mxu1 %v4509_v50 }
0x139f   :  { %3911 = vmatprep.subr.bf16.mxu1 %v4139_v1 }
0x1464   :  { %v1029_v55 = vpop.f32.mrb[8].mxu1 }
0x1465   :  { %v1033_v56 = vadd.f32 %v1029_v55, %v231_v54  ;;  %v3610_v57 = vpop.f32.mrb[9].mxu1 }
0x1466   :  { %v1151_v57 = vadd.f32 %v4479_v34, %v4534_v59 }
0x1467   :  { %v1034_v7 = vmul.f32 %v1033_v56, %v4352_v23 }
0x146c   :  { %v1252_v63 = vpop.f32.mrb[10].mxu1 }
0x146d   :  { %v1256_v0 = vadd.f32 %v1252_v63, %v1143_v62  ;;  %v3633_v3 = vpop.f32.mrb[11].mxu1 }
0x146f   :  { %v1257_v6 = vmul.f32 %v1256_v0, %v4352_v23 }
0x1471   :  { %4044 = vtanh.f32 %v1257_v6 }
0x1472   :  { %4046 = vtanh.f32 %v1034_v7 }
0x147b   :  { %v4045_v4 = vpop.eup %4044 }
0x147c   :  { %v1259_v5 = vmul.f32 %v4045_v4, %v4352_v23  ;;  %v4047_v10 = vpop.eup %4046 }
0x147d   :  { %v1036_v12 = vmul.f32 %v4047_v10, %v4352_v23 }
0x147e   :  { %v1260_v15 = vadd.f32 %v1259_v5, %v4355_v28 }
0x147f   :  { %v1037_v14 = vadd.f32 %v1036_v12, %v4355_v28  ;;  %v1154_v12 = vadd.f32 %v4481_v20, %v4534_v59 }
0x1480   :  { %1263 = vrot.lane.b32.xlu0 %v1260_v15, %s4143_s8  ;;  %v1261_v8 = vmul.f32 0.0, %v1260_v15 }
0x1481   :  { %v1038_v22 = vmul.f32 %v1037_v14, %v4489_v43 }
0x14f2   :  { %v1264_v60 = vpop.permute.xlu0 %1263 }
0x14f3   :  { %v1266_v11 = vmul.f32 %v1264_v60, %v1260_v15 }
0x14f5   :  { %1268 = vrot.lane.b32.xlu1 %v1266_v11, %s4144_s4 }
0x1567   :  { %v1269_v61 = vpop.permute.xlu1 %1268 }
0x1568   :  { %v1271_v9 = vadd.f32 %v1269_v61, %v1261_v8 }
0x156a   :  { %4048 = vtanh.f32 %v1271_v9 }
0x1574   :  { %v4049_v13 = vpop.eup %4048 }
0x1575   :  { %1274 = vrot.lane.b32.xlu0 %v4049_v13, %s4143_s8 }
0x1579   :  { %1040 = vrot.lane.b32.xlu0 %v1037_v14, %s4143_s8 }
0x15e7   :  { %v1275_v16 = vpop.permute.xlu0 %1274 }
0x15e8   :  { %v1277_v17 = vmul.f32 %v1275_v16, %v1260_v15 }
0x15ea   :  { %1279 = vrot.lane.b32.xlu1 %v1277_v17, %s4144_s4 }
0x15eb   :  { %v1041_v18 = vpop.permute.xlu0 %1040 }
0x15ec   :  { %v1043_v19 = vmul.f32 %v1041_v18, %v1037_v14 }
0x15ee   :  { %1045 = vrot.lane.b32.xlu0 %v1043_v19, %s4144_s4 }
0x165c   :  { %v1280_v21 = vpop.permute.xlu1 %1279 }
0x165d   :  { %1282 = vst.msk [vmem:[#allocation4] sm:$0xff] %vm156_vm1, %v1280_v21  ;;  %3643 = vmatmul.mubr.msk.f32.vlgmr.msra.gmra.mrb[12].mxu1 %vm156_vm1, %v1280_v21 }
0x165e   :  { %3913 = vmatpush3.bf16.msra.mxu1 %v4499_v47  ;;  %3664 = vmatprep.mubr.msk.f32.mxu1 %vm4140_vm0, %v4141_v2 }
0x165f   :  { %3914 = vmatprep.subr.bf16.mxu1 %v4139_v1 }
0x1660   :  { %v1046_v24 = vpop.permute.xlu0 %1045 }
0x1661   :  { %v1048_v25 = vadd.f32 %v1046_v24, %v1038_v22 }
0x1662   :  { %3916 = vmatpush3.bf16.msra.mxu1 %v4509_v50 }
0x1663   :  { %4050 = vtanh.f32 %v1048_v25  ;;  %3923 = vmatprep.subr.bf16.mxu1 %v4139_v1 }
0x166d   :  { %v4051_v26 = vpop.eup %4050 }
0x166e   :  { %1051 = vrot.lane.b32.xlu0 %v4051_v26, %s4143_s8 }
0x16e0   :  { %v1052_v27 = vpop.permute.xlu0 %1051 }
0x16e1   :  { %v1054_v29 = vmul.f32 %v1052_v27, %v1037_v14 }
0x16e3   :  { %1056 = vrot.lane.b32.xlu0 %v1054_v29, %s4144_s4 }
0x1730   :  { %v1352_v31 = vpop.f32.mrb[12].mxu1 }
0x1731   :  { %v1356_v32 = vadd.f32 %v1352_v31, %v1146_v30  ;;  %v3644_v33 = vpop.f32.mrb[13].mxu1 }
0x1733   :  { %v1357_v35 = vmul.f32 %v1356_v32, %v4352_v23 }
0x1735   :  { %4052 = vtanh.f32 %v1357_v35 }
0x173f   :  { %v4053_v37 = vpop.eup %4052 }
0x1740   :  { %v1359_v38 = vmul.f32 %v4053_v37, %v4352_v23 }
0x1742   :  { %v1360_v39 = vadd.f32 %v1359_v38, %v4355_v28 }
0x1744   :  { %1363 = vrot.lane.b32.xlu1 %v1360_v39, %s4143_s8  ;;  %v1361_v44 = vmul.f32 %v1360_v39, %v1271_v9 }
0x1755   :  { %v1057_v58 = vpop.permute.xlu0 %1056 }
0x1756   :  { %1060 = vst.msk [vmem:[#allocation3 + $0x38] sm:$0xff] %vm156_vm1, %v1057_v58 }
0x175d   :  { %v1068_v41 = vld [vmem:[#allocation3 + $0x38] sm:$0xff] }
0x175e   :  { %v1072_v42 = vpack.c.bf16 %v1068_v41, %v1067_v40 }
0x1760   :  { %3620 = vmatmul.mubr.msk.bf16.gmra.mrb[20].mxu0 %vm156_vm1, %v1072_v42 }
0x1761   :  { %3653 = vmatprep.mubr.msk.f32.mxu0 %vm4140_vm0, %v4141_v2 }
0x17b6   :  { %v1364_v36 = vpop.permute.xlu1 %1363 }
0x17b7   :  { %v1366_v43 = vmul.f32 %v1364_v36, %v1360_v39 }
0x17b9   :  { %1368 = vrot.lane.b32.xlu1 %v1366_v43, %s4144_s4 }
0x182b   :  { %v1369_v45 = vpop.permute.xlu1 %1368 }
0x182c   :  { %v1371_v46 = vadd.f32 %v1369_v45, %v1361_v44 }
0x182e   :  { %4054 = vtanh.f32 %v1371_v46 }
0x1833   :  { %v4571_v48 = vpop.f32.mrb[20].mxu0 }
0x1834   :  { %v4573_v49 = vpop.f32.mrb[21].mxu0 }
0x1835   :  { %v4575_v51 = vpop.f32.mrb[22].mxu0  ;;  %v1159_v32 = vadd.f32 %v4534_v59, %v4573_v49 }
0x1836   :  { %v4577_v52 = vpop.f32.mrb[23].mxu0 }
0x1838   :  { %v4055_v53 = vpop.eup %4054 }
0x1839   :  { %1374 = vrot.lane.b32.xlu1 %v4055_v53, %s4143_s8 }
0x18ab   :  { %v1375_v54 = vpop.permute.xlu1 %1374 }
0x18ac   :  { %v1377_v55 = vmul.f32 %v1375_v54, %v1360_v39  ;;  %v1162_v54 = vadd.f32 %v4534_v59, %v4577_v52 }
0x18ae   :  { %1379 = vrot.lane.b32.xlu1 %v1377_v55, %s4144_s4 }
0x1920   :  { %v1380_v56 = vpop.permute.xlu1 %1379 }
0x1921   :  { %1383 = vst.msk [vmem:[#allocation4 + $0x8] sm:$0xff] %vm156_vm1, %v1380_v56  ;;  %3654 = vmatmul.mubr.msk.f32.vlgmr.msra.gmra.mrb[14].mxu0 %vm156_vm1, %v1380_v56 }
0x1922   :  { %3919 = vmatpush3.bf16.msra.mxu0 %v4499_v47  ;;  %3675 = vmatprep.mubr.msk.f32.mxu0 %vm4140_vm0, %v4141_v2 }
0x1923   :  { %3920 = vmatprep.subr.bf16.mxu0 %v4139_v1 }
0x1926   :  { %3922 = vmatpush3.bf16.msra.mxu0 %v4509_v50 }
0x1927   :  { %3929 = vmatprep.subr.bf16.mxu0 %v4139_v1 }
0x19f4   :  { %v1453_v62 = vpop.f32.mrb[14].mxu0 }
0x19f5   :  { %v1457_v63 = vadd.f32 %v1453_v62, %v1151_v57  ;;  %v3655_v0 = vpop.f32.mrb[15].mxu0 }
0x19f7   :  { %v1458_v3 = vmul.f32 %v1457_v63, %v4352_v23 }
0x19f9   :  { %4056 = vtanh.f32 %v1458_v3 }
0x1a03   :  { %v4057_v6 = vpop.eup %4056 }
0x1a04   :  { %v1460_v4 = vmul.f32 %v4057_v6, %v4352_v23 }
0x1a06   :  { %v1461_v5 = vadd.f32 %v1460_v4, %v4355_v28 }
0x1a08   :  { %1464 = vrot.lane.b32.xlu0 %v1461_v5, %s4143_s8  ;;  %v1462_v11 = vmul.f32 %v1461_v5, %v1371_v46 }
0x1a7a   :  { %v1465_v15 = vpop.permute.xlu0 %1464 }
0x1a7b   :  { %v1467_v60 = vmul.f32 %v1465_v15, %v1461_v5 }
0x1a7d   :  { %1469 = vrot.lane.b32.xlu1 %v1467_v60, %s4144_s4 }
0x1aef   :  { %v1470_v7 = vpop.permute.xlu1 %1469 }
0x1af0   :  { %v1472_v34 = vadd.f32 %v1470_v7, %v1462_v11  ;;  %v1991_v7 = vld [vmem:[#allocation4 + $0x8] sm:$0xff] }
0x1af2   :  { %4058 = vtanh.f32 %v1472_v34 }
0x1afc   :  { %v4059_v8 = vpop.eup %4058 }
0x1afd   :  { %1475 = vrot.lane.b32.xlu0 %v4059_v8, %s4143_s8  ;;  %v4006_v8 = vld [vmem:[%s4993_s6 + $0x8] sm:$0xff]  }
0x1b6f   :  { %v1476_v61 = vpop.permute.xlu0 %1475 }
0x1b70   :  { %v1478_v9 = vmul.f32 %v1476_v61, %v1461_v5  ;;  %v4005_v5 = vld [vmem:[%s4993_s6] sm:$0xff]   ;;  %s4995_s6 = sld [smem:[#allocation18_spill]] }
0x1b72   :  { %1480 = vrot.lane.b32.xlu1 %v1478_v9, %s4144_s4 }
0x1be4   :  { %v1481_v10 = vpop.permute.xlu1 %1480 }
0x1be5   :  { %1484 = vst.msk [vmem:[#allocation4 + $0x10] sm:$0xff] %vm156_vm1, %v1481_v10  ;;  %3665 = vmatmul.mubr.msk.f32.vlgmr.msra.gmra.mrb[14].mxu1 %vm156_vm1, %v1481_v10 }
0x1be6   :  { %3925 = vmatpush3.bf16.msra.mxu1 %v4499_v47  ;;  %3686 = vmatprep.mubr.msk.f32.mxu1 %vm4140_vm0, %v4141_v2 }
0x1be7   :  { %3926 = vmatprep.subr.bf16.mxu1 %v4139_v1 }
0x1bea   :  { %3928 = vmatpush3.bf16.msra.mxu1 %v4509_v50 }
0x1beb   :  { %3935 = vmatprep.subr.bf16.mxu1 %v4139_v1 }
0x1cb8   :  { %v1554_v13 = vpop.f32.mrb[14].mxu1 }
0x1cb9   :  { %v1558_v14 = vadd.f32 %v1554_v13, %v1154_v12  ;;  %v3666_v16 = vpop.f32.mrb[15].mxu1  ;;  %v1992_v12 = vld [vmem:[#allocation4 + $0x10] sm:$0xff] }
0x1cbb   :  { %v1559_v17 = vmul.f32 %v1558_v14, %v4352_v23 }
0x1cbd   :  { %4060 = vtanh.f32 %v1559_v17 }
0x1cc7   :  { %v4061_v18 = vpop.eup %4060 }
0x1cc8   :  { %v1561_v19 = vmul.f32 %v4061_v18, %v4352_v23  ;;  %v1167_v18 = vadd.f32 %v4571_v48, %v4534_v59 }
0x1cca   :  { %v1562_v21 = vadd.f32 %v1561_v19, %v4355_v28 }
0x1ccc   :  { %1565 = vrot.lane.b32.xlu0 %v1562_v21, %s4143_s8  ;;  %v1563_v25 = vmul.f32 %v1562_v21, %v1472_v34  ;;  %v1990_v34 = vld [vmem:[#allocation4] sm:$0xff] }
0x1ccd   :  { %v1998_v9 = vpack.c.bf16 %v1991_v7, %v1990_v34 }
0x1d3e   :  { %v1566_v22 = vpop.permute.xlu0 %1565 }
0x1d3f   :  { %v1568_v24 = vmul.f32 %v1566_v22, %v1562_v21 }
0x1d41   :  { %1570 = vrot.lane.b32.xlu1 %v1568_v24, %s4144_s4 }
0x1db3   :  { %v1571_v26 = vpop.permute.xlu1 %1570 }
0x1db4   :  { %v1573_v20 = vadd.f32 %v1571_v26, %v1563_v25 }
0x1db6   :  { %4062 = vtanh.f32 %v1573_v20 }
0x1dc0   :  { %v4063_v27 = vpop.eup %4062 }
0x1dc1   :  { %1576 = vrot.lane.b32.xlu0 %v4063_v27, %s4143_s8 }
0x1e33   :  { %v1577_v29 = vpop.permute.xlu0 %1576 }
0x1e34   :  { %v1579_v30 = vmul.f32 %v1577_v29, %v1562_v21 }
0x1e36   :  { %1581 = vrot.lane.b32.xlu1 %v1579_v30, %s4144_s4 }
0x1ea8   :  { %v1582_v31 = vpop.permute.xlu1 %1581 }
0x1ea9   :  { %1585 = vst.msk [vmem:[#allocation4 + $0x18] sm:$0xff] %vm156_vm1, %v1582_v31  ;;  %3676 = vmatmul.mubr.msk.f32.vlgmr.msra.gmra.mrb[24].mxu0 %vm156_vm1, %v1582_v31 }
0x1eaa   :  { %3931 = vmatpush3.bf16.msra.mxu0 %v4499_v47  ;;  %3697 = vmatprep.mubr.msk.f32.mxu0 %vm4140_vm0, %v4141_v2 }
0x1eab   :  { %3932 = vmatprep.subr.bf16.mxu0 %v4139_v1 }
0x1eae   :  { %3934 = vmatpush3.bf16.msra.mxu0 %v4509_v50 }
0x1eaf   :  { %3711 = vmatprep.subr.bf16.mxu0 %v4005_v5 }
0x1eb0   :  { %v1993_v10 = vld [vmem:[#allocation4 + $0x18] sm:$0xff] }
0x1eb1   :  { %v1999_v13 = vpack.c.bf16 %v1993_v10, %v1992_v12 }
0x1f7c   :  { %v1655_v33 = vpop.f32.mrb[24].mxu0 }
0x1f7d   :  { %v1659_v35 = vadd.f32 %v1655_v33, %v1159_v32  ;;  %v3677_v37 = vpop.f32.mrb[25].mxu0 }
0x1f7f   :  { %v1660_v38 = vmul.f32 %v1659_v35, %v4352_v23 }
0x1f81   :  { %4064 = vtanh.f32 %v1660_v38 }
0x1f8b   :  { %v4065_v39 = vpop.eup %4064 }
0x1f8c   :  { %v1662_v58 = vmul.f32 %v4065_v39, %v4352_v23  ;;  %v2110_v39 = vld [vmem:[%s4994_s0] sm:$0xff] }
0x1f8e   :  { %v1663_v40 = vadd.f32 %v1662_v58, %v4355_v28  ;;  %v2111_v58 = vld [vmem:[%s4994_s0 + $0x8] sm:$0xff] }
0x1f90   :  { %1666 = vrot.lane.b32.xlu0 %v1663_v40, %s4143_s8  ;;  %v1664_v36 = vmul.f32 %v1663_v40, %v1573_v20 }
0x2002   :  { %v1667_v41 = vpop.permute.xlu0 %1666 }
0x2003   :  { %v1669_v42 = vmul.f32 %v1667_v41, %v1663_v40  ;;  %v2112_v41 = vld [vmem:[%s4994_s0 + $0x10] sm:$0xff] }
0x2005   :  { %1671 = vrot.lane.b32.xlu1 %v1669_v42, %s4144_s4  ;;  %v2113_v42 = vld [vmem:[%s4994_s0 + $0x18] sm:$0xff] }
0x2077   :  { %v1672_v43 = vpop.permute.xlu1 %1671 }
0x2078   :  { %v1674_v44 = vadd.f32 %v1672_v43, %v1664_v36  ;;  %v4693_v36 = vpack.c.bf16 %v2113_v42, %v2112_v41 }
0x207a   :  { %4066 = vtanh.f32 %v1674_v44 }
0x2084   :  { %v4067_v45 = vpop.eup %4066 }
0x2085   :  { %1677 = vrot.lane.b32.xlu0 %v4067_v45, %s4143_s8 }
0x20f7   :  { %v1678_v46 = vpop.permute.xlu0 %1677 }
0x20f8   :  { %v1680_v49 = vmul.f32 %v1678_v46, %v1663_v40  ;;  %v4683_v40 = vpack.c.bf16 %v2111_v58, %v2110_v39  ;;  %v1170_v46 = vadd.f32 %v4575_v51, %v4534_v59 }
0x20fa   :  { %1682 = vrot.lane.b32.xlu1 %v1680_v49, %s4144_s4 }
0x216c   :  { %v1683_v53 = vpop.permute.xlu1 %1682 }
0x216d   :  { %1686 = vst.msk [vmem:[#allocation4 + $0x20] sm:$0xff] %vm156_vm1, %v1683_v53  ;;  %3687 = vmatmul.mubr.msk.f32.vlgmr.msra.gmra.mrb[16].mxu1 %vm156_vm1, %v1683_v53 }
0x216e   :  { %3937 = vmatpush3.bf16.msra.mxu1 %v4499_v47  ;;  %3708 = vmatprep.mubr.msk.f32.mxu1 %vm4140_vm0, %v4141_v2 }
0x216f   :  { %3938 = vmatprep.subr.bf16.mxu1 %v4139_v1 }
0x2172   :  { %3940 = vmatpush3.bf16.msra.mxu1 %v4509_v50 }
0x2173   :  { %3941 = vmatprep.subr.bf16.mxu1 %v4139_v1 }
0x2174   :  { %v1994_v14 = vld [vmem:[#allocation4 + $0x20] sm:$0xff] }
0x2240   :  { %v1756_v55 = vpop.f32.mrb[16].mxu1 }
0x2241   :  { %v1760_v56 = vadd.f32 %v1756_v55, %v1162_v54  ;;  %v3688_v57 = vpop.f32.mrb[17].mxu1  ;;  %v4718_v55 = vld [vmem:[%s4995_s6] ss:$0 sm:$0xff] }
0x2243   :  { %v1761_v62 = vmul.f32 %v1760_v56, %v4352_v23 }
0x2245   :  { %4068 = vtanh.f32 %v1761_v62 }
0x224f   :  { %v4069_v63 = vpop.eup %4068 }
0x2250   :  { %v1763_v47 = vmul.f32 %v4069_v63, %v4352_v23 }
0x2252   :  { %v1764_v0 = vadd.f32 %v1763_v47, %v4355_v28 }
0x2254   :  { %1767 = vrot.lane.b32.xlu0 %v1764_v0, %s4143_s8  ;;  %v1765_v6 = vmul.f32 %v1764_v0, %v1674_v44 }
0x22c6   :  { %v1768_v3 = vpop.permute.xlu0 %1767 }
0x22c7   :  { %v1770_v50 = vmul.f32 %v1768_v3, %v1764_v0 }
0x22c9   :  { %1772 = vrot.lane.b32.xlu1 %v1770_v50, %s4144_s4 }
0x233b   :  { %v1773_v4 = vpop.permute.xlu1 %1772 }
0x233c   :  { %v1775_v52 = vadd.f32 %v1773_v4, %v1765_v6 }
0x233e   :  { %4070 = vtanh.f32 %v1775_v52 }
0x2348   :  { %v4071_v15 = vpop.eup %4070 }
0x2349   :  { %1778 = vrot.lane.b32.xlu0 %v4071_v15, %s4143_s8 }
0x23bb   :  { %v1779_v60 = vpop.permute.xlu0 %1778 }
0x23bc   :  { %v1781_v11 = vmul.f32 %v1779_v60, %v1764_v0 }
0x23be   :  { %1783 = vrot.lane.b32.xlu1 %v1781_v11, %s4144_s4 }
0x2430   :  { %v1784_v61 = vpop.permute.xlu1 %1783 }
0x2431   :  { %1787 = vst.msk [vmem:[#allocation4 + $0x28] sm:$0xff] %vm156_vm1, %v1784_v61  ;;  %3698 = vmatmul.mubr.msk.f32.vlgmr.msra.gmra.mrb[26].mxu0 %vm156_vm1, %v1784_v61 }
0x2432   :  { %3712 = vmatpush3.bf16.msra.mxu0 %v4005_v5  ;;  %3715 = vmatprep.mubr.msk.bf16.mxu0 %vm156_vm1, %v1998_v9 }
0x2433   :  { %3713 = vmatprep.subr.bf16.mxu0 %v4006_v8 }
0x2436   :  { %3714 = vmatpush3.bf16.msra.mxu0 %v4006_v8 }
0x2437   :  { %3953 = vmatprep.subr.bf16.mxu0 %v4139_v1 }
0x2438   :  { %v1995_v16 = vld [vmem:[#allocation4 + $0x28] sm:$0xff] }
0x2439   :  { %3716 = vmatmul.mubr.msk.bf16.vlgmr.msra.gmra.mrb[28].mxu0 %vm156_vm1, %v1999_v13  ;;  %v2000_v17 = vpack.c.bf16 %v1995_v16, %v1994_v14 }
0x243a   :  { %3955 = vmatpush3.bf16.msra.mxu0 %v4683_v40 }
0x243b   :  { %3719 = vmatprep.mubr.msk.bf16.mxu0 %vm156_vm1, %v2000_v17  ;;  %3956 = vmatprep.subr.bf16.mxu0 %v4139_v1 }
0x243e   :  { %3958 = vmatpush3.bf16.msra.mxu0 %v4693_v36 }
0x243f   :  { %3965 = vmatprep.subr.bf16.mxu0 %v4139_v1 }
0x2504   :  { %v1857_v19 = vpop.f32.mrb[26].mxu0 }
0x2505   :  { %v1861_v21 = vadd.f32 %v1857_v19, %v1167_v18  ;;  %v3699_v22 = vpop.f32.mrb[27].mxu0 }
0x2507   :  { %v1862_v24 = vmul.f32 %v1861_v21, %v4352_v23 }
0x2509   :  { %4072 = vtanh.f32 %v1862_v24 }
0x250c   :  { %v4663_v25 = vpop.f32.mrb[28].mxu0 }
0x250d   :  { %v2071_v26 = vpop.f32.mrb[29].mxu0 }
0x250e   :  { %v4665_v20 = vpop.f32.mrb[30].mxu0  ;;  %v2072_v56 = vadd.f32 %v4718_v55, %v2071_v26 }
0x250f   :  { %v4667_v27 = vpop.f32.mrb[31].mxu0 }
0x2510   :  { %v2075_v19 = vadd.f32 %v4718_v55, %v4667_v27 }
0x2513   :  { %v4073_v29 = vpop.eup %4072 }
0x2514   :  { %v1864_v30 = vmul.f32 %v4073_v29, %v4352_v23 }
0x2516   :  { %v1865_v31 = vadd.f32 %v1864_v30, %v4355_v28 }
0x2518   :  { %1868 = vrot.lane.b32.xlu0 %v1865_v31, %s4143_s8  ;;  %v1866_v33 = vmul.f32 %v1865_v31, %v1775_v52 }
0x258a   :  { %v1869_v48 = vpop.permute.xlu0 %1868 }
0x258b   :  { %v1871_v32 = vmul.f32 %v1869_v48, %v1865_v31 }
0x258d   :  { %1873 = vrot.lane.b32.xlu1 %v1871_v32, %s4144_s4 }
0x25ff   :  { %v1874_v35 = vpop.permute.xlu1 %1873 }
0x2600   :  { %v4673_v37 = vadd.f32 %v1874_v35, %v1866_v33 }
0x2602   :  { %4074 = vtanh.f32 %v4673_v37 }
0x260c   :  { %v4075_v38 = vpop.eup %4074 }
0x260d   :  { %1879 = vrot.lane.b32.xlu0 %v4075_v38, %s4143_s8 }
0x267f   :  { %v1880_v43 = vpop.permute.xlu0 %1879 }
0x2680   :  { %v1882_v44 = vmul.f32 %v1880_v43, %v1865_v31 }
0x2682   :  { %1884 = vrot.lane.b32.xlu1 %v1882_v44, %s4144_s4 }
0x26f4   :  { %v1885_v45 = vpop.permute.xlu1 %1884 }
0x26f5   :  { %1888 = vst.msk [vmem:[#allocation4 + $0x30] sm:$0xff] %vm156_vm1, %v1885_v45  ;;  %3709 = vmatmul.mubr.msk.f32.vlgmr.msra.gmra.mrb[18].mxu1 %vm156_vm1, %v1885_v45 }
0x26f6   :  { %3943 = vmatpush3.bf16.msra.mxu1 %v4683_v40  ;;  %3731 = vmatprep.mubr.msk.f32.mxu1 %vm4140_vm0, %v4141_v2 }
0x26f7   :  { %3944 = vmatprep.subr.bf16.mxu1 %v4139_v1 }
0x26fa   :  { %3946 = vmatpush3.bf16.msra.mxu1 %v4693_v36 }
0x26fb   :  { %3947 = vmatprep.subr.bf16.mxu1 %v4139_v1 }
0x26fc   :  { %v1996_v32 = vld [vmem:[#allocation4 + $0x30] sm:$0xff] }
0x26fd   :  { %3732 = vmatmul.mubr.f32.vlgmr.msra.gmra.mrb[20].mxu1 %v4141_v2 }
0x26fe   :  { %3949 = vmatpush3.bf16.msra.mxu1 %v4683_v40  ;;  %3742 = vmatprep.mubr.msk.f32.mxu1 %vm4140_vm0, %v4141_v2 }
0x26ff   :  { %3950 = vmatprep.subr.bf16.mxu1 %v4139_v1 }
0x2702   :  { %3952 = vmatpush3.bf16.msra.mxu1 %v4693_v36 }
0x2703   :  { %3959 = vmatprep.subr.bf16.mxu1 %v4139_v1 }
0x27c8   :  { %v1958_v49 = vpop.f32.mrb[18].mxu1 }
0x27c9   :  { %v1962_v53 = vadd.f32 %v1958_v49, %v1170_v46  ;;  %v3710_v54 = vpop.f32.mrb[19].mxu1 }
0x27ca   :  { %v2080_v54 = vadd.f32 %v4663_v25, %v4718_v55 }
0x27cb   :  { %v1963_v6 = vmul.f32 %v1962_v53, %v4352_v23 }
0x27d0   :  { %v2181_v57 = vpop.f32.mrb[20].mxu1 }
0x27d1   :  { %v2185_v62 = vadd.f32 %v2181_v57, %v2072_v56  ;;  %v3733_v63 = vpop.f32.mrb[21].mxu1 }
0x27d3   :  { %v2186_v47 = vmul.f32 %v2185_v62, %v4352_v23 }
0x27d5   :  { %4076 = vtanh.f32 %v2186_v47 }
0x27d6   :  { %4078 = vtanh.f32 %v1963_v6 }
0x27df   :  { %v4077_v0 = vpop.eup %4076 }
0x27e0   :  { %v2188_v3 = vmul.f32 %v4077_v0, %v4352_v23  ;;  %v4079_v15 = vpop.eup %4078 }
0x27e1   :  { %v1965_v60 = vmul.f32 %v4079_v15, %v4352_v23 }
0x27e2   :  { %v2189_v59 = vadd.f32 %v2188_v3, %v4355_v28 }
0x27e3   :  { %v1966_v7 = vadd.f32 %v1965_v60, %v4355_v28  ;;  %v2083_v60 = vadd.f32 %v4665_v20, %v4718_v55 }
0x27e4   :  { %2192 = vrot.lane.b32.xlu0 %v2189_v59, %s4143_s8  ;;  %v2190_v4 = vmul.f32 0.0, %v2189_v59 }
0x27e5   :  { %v1967_v12 = vmul.f32 %v1966_v7, %v4673_v37 }
0x2856   :  { %v2193_v51 = vpop.permute.xlu0 %2192 }
0x2857   :  { %v2195_v50 = vmul.f32 %v2193_v51, %v2189_v59 }
0x2859   :  { %2197 = vrot.lane.b32.xlu1 %v2195_v50, %s4144_s4 }
0x28cb   :  { %v2198_v52 = vpop.permute.xlu1 %2197 }
0x28cc   :  { %v2200_v5 = vadd.f32 %v2198_v52, %v2190_v4 }
0x28ce   :  { %4080 = vtanh.f32 %v2200_v5 }
0x28d8   :  { %v4081_v11 = vpop.eup %4080 }
0x28d9   :  { %2203 = vrot.lane.b32.xlu0 %v4081_v11, %s4143_s8 }
0x28dd   :  { %1969 = vrot.lane.b32.xlu0 %v1966_v7, %s4143_s8 }
0x294b   :  { %v2204_v34 = vpop.permute.xlu0 %2203 }
0x294c   :  { %v2206_v8 = vmul.f32 %v2204_v34, %v2189_v59 }
0x294e   :  { %2208 = vrot.lane.b32.xlu1 %v2206_v8, %s4144_s4 }
0x294f   :  { %v1970_v61 = vpop.permute.xlu0 %1969 }
0x2950   :  { %v1972_v9 = vmul.f32 %v1970_v61, %v1966_v7 }
0x2952   :  { %1974 = vrot.lane.b32.xlu0 %v1972_v9, %s4144_s4 }
0x29c0   :  { %v2209_v10 = vpop.permute.xlu1 %2208 }
0x29c1   :  { %2211 = vst.msk [vmem:[#allocation3] sm:$0xff] %vm156_vm1, %v2209_v10  ;;  %3743 = vmatmul.mubr.msk.f32.vlgmr.msra.gmra.mrb[22].mxu1 %vm156_vm1, %v2209_v10 }
0x29c2   :  { %3961 = vmatpush3.bf16.msra.mxu1 %v4683_v40  ;;  %3764 = vmatprep.mubr.msk.f32.mxu1 %vm4140_vm0, %v4141_v2 }
0x29c3   :  { %3962 = vmatprep.subr.bf16.mxu1 %v4139_v1 }
0x29c4   :  { %v1975_v13 = vpop.permute.xlu0 %1974 }
0x29c5   :  { %v1977_v14 = vadd.f32 %v1975_v13, %v1967_v12 }
0x29c6   :  { %3964 = vmatpush3.bf16.msra.mxu1 %v4693_v36 }
0x29c7   :  { %4082 = vtanh.f32 %v1977_v14  ;;  %3971 = vmatprep.subr.bf16.mxu1 %v4139_v1 }
0x29d1   :  { %v4083_v16 = vpop.eup %4082 }
0x29d2   :  { %1980 = vrot.lane.b32.xlu0 %v4083_v16, %s4143_s8 }
0x2a44   :  { %v1981_v17 = vpop.permute.xlu0 %1980 }
0x2a45   :  { %v1983_v18 = vmul.f32 %v1981_v17, %v1966_v7 }
0x2a47   :  { %1985 = vrot.lane.b32.xlu0 %v1983_v18, %s4144_s4 }
0x2a94   :  { %v2281_v21 = vpop.f32.mrb[22].mxu1 }
0x2a95   :  { %v2285_v22 = vadd.f32 %v2281_v21, %v2075_v19  ;;  %v3744_v24 = vpop.f32.mrb[23].mxu1 }
0x2a97   :  { %v2286_v26 = vmul.f32 %v2285_v22, %v4352_v23 }
0x2a99   :  { %4084 = vtanh.f32 %v2286_v26 }
0x2aa3   :  { %v4085_v29 = vpop.eup %4084 }
0x2aa4   :  { %v2288_v30 = vmul.f32 %v4085_v29, %v4352_v23 }
0x2aa6   :  { %v2289_v31 = vadd.f32 %v2288_v30, %v4355_v28 }
0x2aa8   :  { %2292 = vrot.lane.b32.xlu1 %v2289_v31, %s4143_s8  ;;  %v2290_v38 = vmul.f32 %v2289_v31, %v2200_v5 }
0x2ab9   :  { %v1986_v48 = vpop.permute.xlu0 %1985 }
0x2aba   :  { %1989 = vst.msk [vmem:[#allocation4 + $0x38] sm:$0xff] %vm156_vm1, %v1986_v48 }
0x2ac1   :  { %v1997_v33 = vld [vmem:[#allocation4 + $0x38] sm:$0xff] }
0x2ac2   :  { %v2001_v35 = vpack.c.bf16 %v1997_v33, %v1996_v32 }
0x2ac4   :  { %3720 = vmatmul.mubr.msk.bf16.gmra.mrb[32].mxu0 %vm156_vm1, %v2001_v35 }
0x2ac5   :  { %3753 = vmatprep.mubr.msk.f32.mxu0 %vm4140_vm0, %v4141_v2 }
0x2b1a   :  { %v2293_v27 = vpop.permute.xlu1 %2292 }
0x2b1b   :  { %v2295_v37 = vmul.f32 %v2293_v27, %v2289_v31 }
0x2b1d   :  { %2297 = vrot.lane.b32.xlu1 %v2295_v37, %s4144_s4 }
0x2b8f   :  { %v2298_v39 = vpop.permute.xlu1 %2297 }
0x2b90   :  { %v2300_v58 = vadd.f32 %v2298_v39, %v2290_v38 }
0x2b92   :  { %4086 = vtanh.f32 %v2300_v58 }
0x2b97   :  { %v4755_v41 = vpop.f32.mrb[32].mxu0 }
0x2b98   :  { %v4757_v42 = vpop.f32.mrb[33].mxu0 }
0x2b99   :  { %v4759_v43 = vpop.f32.mrb[34].mxu0  ;;  %v2088_v22 = vadd.f32 %v4718_v55, %v4757_v42 }
0x2b9a   :  { %v4761_v44 = vpop.f32.mrb[35].mxu0 }
0x2b9c   :  { %v4087_v45 = vpop.eup %4086 }
0x2b9d   :  { %2303 = vrot.lane.b32.xlu1 %v4087_v45, %s4143_s8 }
0x2c0f   :  { %v2304_v46 = vpop.permute.xlu1 %2303 }
0x2c10   :  { %v2306_v49 = vmul.f32 %v2304_v46, %v2289_v31  ;;  %v2091_v46 = vadd.f32 %v4718_v55, %v4761_v44 }
0x2c12   :  { %2308 = vrot.lane.b32.xlu1 %v2306_v49, %s4144_s4 }
0x2c84   :  { %v2309_v53 = vpop.permute.xlu1 %2308 }
0x2c85   :  { %2311 = vst.msk [vmem:[#allocation3 + $0x8] sm:$0xff] %vm156_vm1, %v2309_v53  ;;  %3754 = vmatmul.mubr.msk.f32.vlgmr.msra.gmra.mrb[36].mxu0 %vm156_vm1, %v2309_v53 }
0x2c86   :  { %3967 = vmatpush3.bf16.msra.mxu0 %v4683_v40  ;;  %3775 = vmatprep.mubr.msk.f32.mxu0 %vm4140_vm0, %v4141_v2 }
0x2c87   :  { %3968 = vmatprep.subr.bf16.mxu0 %v4139_v1 }
0x2c8a   :  { %3970 = vmatpush3.bf16.msra.mxu0 %v4693_v36 }
0x2c8b   :  { %3977 = vmatprep.subr.bf16.mxu0 %v4139_v1 }
0x2d58   :  { %v2381_v56 = vpop.f32.mrb[36].mxu0 }
0x2d59   :  { %v2385_v57 = vadd.f32 %v2381_v56, %v2080_v54  ;;  %v3755_v62 = vpop.f32.mrb[37].mxu0 }
0x2d5b   :  { %v2386_v63 = vmul.f32 %v2385_v57, %v4352_v23 }
0x2d5d   :  { %4088 = vtanh.f32 %v2386_v63 }
0x2d67   :  { %v4089_v47 = vpop.eup %4088 }
0x2d68   :  { %v2388_v0 = vmul.f32 %v4089_v47, %v4352_v23 }
0x2d6a   :  { %v2389_v3 = vadd.f32 %v2388_v0, %v4355_v28 }
0x2d6c   :  { %2392 = vrot.lane.b32.xlu0 %v2389_v3, %s4143_s8  ;;  %v2390_v50 = vmul.f32 %v2389_v3, %v2300_v58 }
0x2dde   :  { %v2393_v59 = vpop.permute.xlu0 %2392 }
0x2ddf   :  { %v2395_v51 = vmul.f32 %v2393_v59, %v2389_v3 }
0x2de1   :  { %2397 = vrot.lane.b32.xlu1 %v2395_v51, %s4144_s4 }
0x2e53   :  { %v2398_v6 = vpop.permute.xlu1 %2397 }
0x2e54   :  { %v2400_v25 = vadd.f32 %v2398_v6, %v2390_v50  ;;  %v2096_v50 = vadd.f32 %v4755_v41, %v4718_v55 }
0x2e56   :  { %4090 = vtanh.f32 %v2400_v25 }
0x2e60   :  { %v4091_v4 = vpop.eup %4090 }
0x2e61   :  { %2403 = vrot.lane.b32.xlu0 %v4091_v4, %s4143_s8 }
0x2ed3   :  { %v2404_v52 = vpop.permute.xlu0 %2403 }
0x2ed4   :  { %v2406_v5 = vmul.f32 %v2404_v52, %v2389_v3 }
0x2ed6   :  { %2408 = vrot.lane.b32.xlu1 %v2406_v5, %s4144_s4 }
0x2f48   :  { %v2409_v15 = vpop.permute.xlu1 %2408 }
0x2f49   :  { %2411 = vst.msk [vmem:[#allocation3 + $0x10] sm:$0xff] %vm156_vm1, %v2409_v15  ;;  %3765 = vmatmul.mubr.msk.f32.vlgmr.msra.gmra.mrb[24].mxu1 %vm156_vm1, %v2409_v15 }
0x2f4a   :  { %3973 = vmatpush3.bf16.msra.mxu1 %v4683_v40  ;;  %3786 = vmatprep.mubr.msk.f32.mxu1 %vm4140_vm0, %v4141_v2 }
0x2f4b   :  { %3974 = vmatprep.subr.bf16.mxu1 %v4139_v1 }
0x2f4e   :  { %3976 = vmatpush3.bf16.msra.mxu1 %v4693_v36 }
0x2f4f   :  { %3983 = vmatprep.subr.bf16.mxu1 %v4139_v1 }
0x301c   :  { %v2481_v11 = vpop.f32.mrb[24].mxu1 }
0x301d   :  { %v2485_v7 = vadd.f32 %v2481_v11, %v2083_v60  ;;  %v3766_v34 = vpop.f32.mrb[25].mxu1 }
0x301f   :  { %v2486_v8 = vmul.f32 %v2485_v7, %v4352_v23 }
0x3021   :  { %4092 = vtanh.f32 %v2486_v8 }
0x302b   :  { %v4093_v61 = vpop.eup %4092 }
0x302c   :  { %v2488_v9 = vmul.f32 %v4093_v61, %v4352_v23 }
0x302e   :  { %v2489_v10 = vadd.f32 %v2488_v9, %v4355_v28 }
0x3030   :  { %2492 = vrot.lane.b32.xlu0 %v2489_v10, %s4143_s8  ;;  %v2490_v14 = vmul.f32 %v2489_v10, %v2400_v25 }
0x30a2   :  { %v2493_v12 = vpop.permute.xlu0 %2492 }
0x30a3   :  { %v2495_v13 = vmul.f32 %v2493_v12, %v2489_v10 }
0x30a5   :  { %2497 = vrot.lane.b32.xlu1 %v2495_v13, %s4144_s4  ;;  %v2099_v13 = vadd.f32 %v4759_v43, %v4718_v55 }
0x3117   :  { %v2498_v16 = vpop.permute.xlu1 %2497 }
0x3118   :  { %v2500_v20 = vadd.f32 %v2498_v16, %v2490_v14 }
0x311a   :  { %4094 = vtanh.f32 %v2500_v20 }
0x3124   :  { %v4095_v17 = vpop.eup %4094 }
0x3125   :  { %2503 = vrot.lane.b32.xlu0 %v4095_v17, %s4143_s8 }
0x3197   :  { %v2504_v18 = vpop.permute.xlu0 %2503 }
0x3198   :  { %v2506_v19 = vmul.f32 %v2504_v18, %v2489_v10 }
0x319a   :  { %2508 = vrot.lane.b32.xlu1 %v2506_v19, %s4144_s4 }
0x320c   :  { %v2509_v21 = vpop.permute.xlu1 %2508 }
0x320d   :  { %2511 = vst.msk [vmem:[#allocation3 + $0x18] sm:$0xff] %vm156_vm1, %v2509_v21  ;;  %3776 = vmatmul.mubr.msk.f32.vlgmr.msra.gmra.mrb[38].mxu0 %vm156_vm1, %v2509_v21 }
0x320e   :  { %3979 = vmatpush3.bf16.msra.mxu0 %v4683_v40  ;;  %3797 = vmatprep.mubr.msk.f32.mxu0 %vm4140_vm0, %v4141_v2 }
0x320f   :  { %3980 = vmatprep.subr.bf16.mxu0 %v4139_v1 }
0x3212   :  { %3982 = vmatpush3.bf16.msra.mxu0 %v4693_v36 }
0x3213   :  { %3811 = vmatprep.subr.bf16.mxu0 %v4141_v2 }
0x32e0   :  { %v2581_v24 = vpop.f32.mrb[38].mxu0 }
0x32e1   :  { %v2585_v26 = vadd.f32 %v2581_v24, %v2088_v22  ;;  %v3777_v29 = vpop.f32.mrb[39].mxu0 }
0x32e3   :  { %v2586_v30 = vmul.f32 %v2585_v26, %v4352_v23 }
0x32e5   :  { %4096 = vtanh.f32 %v2586_v30 }
0x32ef   :  { %v4097_v31 = vpop.eup %4096 }
0x32f0   :  { %v2588_v48 = vmul.f32 %v4097_v31, %v4352_v23 }
0x32f2   :  { %v2589_v32 = vadd.f32 %v2588_v48, %v4355_v28  ;;  %v3335_v48 = vld [vmem:[%s4996_s3] ss:$0 sm:$0xff] }
0x32f4   :  { %2592 = vrot.lane.b32.xlu0 %v2589_v32, %s4143_s8  ;;  %v2590_v27 = vmul.f32 %v2589_v32, %v2500_v20 }
0x3366   :  { %v2593_v33 = vpop.permute.xlu0 %2592 }
0x3367   :  { %v2595_v35 = vmul.f32 %v2593_v33, %v2589_v32 }
0x3369   :  { %2597 = vrot.lane.b32.xlu1 %v2595_v35, %s4144_s4 }
0x33db   :  { %v2598_v37 = vpop.permute.xlu1 %2597 }
0x33dc   :  { %v2600_v38 = vadd.f32 %v2598_v37, %v2590_v27 }
0x33de   :  { %4098 = vtanh.f32 %v2600_v38 }
0x33e8   :  { %v4099_v39 = vpop.eup %4098 }
0x33e9   :  { %2603 = vrot.lane.b32.xlu0 %v4099_v39, %s4143_s8  ;;  %v3336_v39 = vld [vmem:[%s4951_s11] ss:$0 sm:$0xff] }
0x345b   :  { %v2604_v58 = vpop.permute.xlu0 %2603 }
0x345c   :  { %v2606_v42 = vmul.f32 %v2604_v58, %v2589_v32  ;;  %v4007_v58 = vld [vmem:[%s4952_s12] sm:$0xff]  }
0x345e   :  { %2608 = vrot.lane.b32.xlu1 %v2606_v42, %s4144_s4  ;;  %v4008_v42 = vld [vmem:[%s4952_s12 + $0x8] sm:$0xff]  }
0x34d0   :  { %v2609_v45 = vpop.permute.xlu1 %2608 }
0x34d1   :  { %2611 = vst.msk [vmem:[#allocation3 + $0x20] sm:$0xff] %vm156_vm1, %v2609_v45  ;;  %3787 = vmatmul.mubr.msk.f32.vlgmr.msra.gmra.mrb[26].mxu1 %vm156_vm1, %v2609_v45 }
0x34d2   :  { %3985 = vmatpush3.bf16.msra.mxu1 %v4683_v40  ;;  %3808 = vmatprep.mubr.msk.f32.mxu1 %vm4140_vm0, %v4141_v2 }
0x34d3   :  { %3986 = vmatprep.subr.bf16.mxu1 %v4139_v1 }
0x34d6   :  { %3988 = vmatpush3.bf16.msra.mxu1 %v4693_v36 }
0x34d7   :  { %3819 = vmatprep.subr.bf16.mxu1 %v4141_v2 }
0x35a4   :  { %v2681_v49 = vpop.f32.mrb[26].mxu1 }
0x35a5   :  { %v2685_v53 = vadd.f32 %v2681_v49, %v2091_v46  ;;  %v3788_v54 = vpop.f32.mrb[27].mxu1 }
0x35a7   :  { %v2686_v56 = vmul.f32 %v2685_v53, %v4352_v23  ;;  %v4009_v53 = vld [vmem:[%s4956_s16] sm:$0xff]  }
0x35a9   :  { %4100 = vtanh.f32 %v2686_v56 }
0x35b3   :  { %v4101_v57 = vpop.eup %4100 }
0x35b4   :  { %v2688_v40 = vmul.f32 %v4101_v57, %v4352_v23 }
0x35b6   :  { %v2689_v62 = vadd.f32 %v2688_v40, %v4355_v28 }
0x35b8   :  { %2692 = vrot.lane.b32.xlu0 %v2689_v62, %s4143_s8  ;;  %v2690_v63 = vmul.f32 %v2689_v62, %v2600_v38 }
0x362a   :  { %v2693_v1 = vpop.permute.xlu0 %2692 }
0x362b   :  { %v2695_v36 = vmul.f32 %v2693_v1, %v2689_v62 }
0x362d   :  { %2697 = vrot.lane.b32.xlu1 %v2695_v36, %s4144_s4 }
0x369f   :  { %v2698_v47 = vpop.permute.xlu1 %2697 }
0x36a0   :  { %v2700_v44 = vadd.f32 %v2698_v47, %v2690_v63  ;;  %v4010_v47 = vld [vmem:[%s4956_s16 + $0x8] sm:$0xff]  }
0x36a2   :  { %4102 = vtanh.f32 %v2700_v44 }
0x36ac   :  { %v4103_v0 = vpop.eup %4102 }
0x36ad   :  { %2703 = vrot.lane.b32.xlu0 %v4103_v0, %s4143_s8  ;;  %v4012_v0 = vld [vmem:[%s4956_s16 + $0x18] sm:$0xff]  }
0x371f   :  { %v2704_v3 = vpop.permute.xlu0 %2703 }
0x3720   :  { %v2706_v59 = vmul.f32 %v2704_v3, %v2689_v62  ;;  %v3337_v3 = vld [vmem:[%s4953_s13] ss:$0 sm:$0xff] }
0x3722   :  { %2708 = vrot.lane.b32.xlu1 %v2706_v59, %s4144_s4 }
0x3794   :  { %v2709_v51 = vpop.permute.xlu1 %2708 }
0x3795   :  { %2711 = vst.msk [vmem:[#allocation3 + $0x28] sm:$0xff] %vm156_vm1, %v2709_v51  ;;  %3798 = vmatmul.mubr.msk.f32.vlgmr.msra.gmra.mrb[40].mxu0 %vm156_vm1, %v2709_v51  ;;  %v3341_v51 = vld [vmem:[%s4954_s14] ss:$0 sm:$0xff] }
0x3796   :  { %3815 = vmatprep.mubr.msk.bf16.mxu0 %vm4140_vm0, %v4141_v2  ;;  %3812 = vmatpush3.bf16.msra.mxu0 %v4007_v58 }
0x3797   :  { %3813 = vmatprep.subr.bf16.mxu0 %v4141_v2 }
0x379a   :  { %3814 = vmatpush3.bf16.msra.mxu0 %v4008_v42 }
0x379b   :  { %3831 = vmatprep.subr.bf16.mxu0 %v4141_v2 }
0x3868   :  { %v2781_v6 = vpop.f32.mrb[40].mxu0 }
0x3869   :  { %v2785_v25 = vadd.f32 %v2781_v6, %v2096_v50  ;;  %v3799_v4 = vpop.f32.mrb[41].mxu0 }
0x386b   :  { %v2786_v52 = vmul.f32 %v2785_v25, %v4352_v23  ;;  %v3342_v25 = vld [vmem:[%s4955_s15] ss:$0 sm:$0xff] }
0x386d   :  { %4104 = vtanh.f32 %v2786_v52 }
0x3877   :  { %v4105_v5 = vpop.eup %4104 }
0x3878   :  { %v2788_v15 = vmul.f32 %v4105_v5, %v4352_v23 }
0x387a   :  { %v2789_v60 = vadd.f32 %v2788_v15, %v4355_v28 }
0x387c   :  { %2792 = vrot.lane.b32.xlu0 %v2789_v60, %s4143_s8  ;;  %v2790_v34 = vmul.f32 %v2789_v60, %v2700_v44  ;;  %v4011_v44 = vld [vmem:[%s4956_s16 + $0x10] sm:$0xff]  }
0x38ee   :  { %v2793_v11 = vpop.permute.xlu0 %2792 }
0x38ef   :  { %v2795_v7 = vmul.f32 %v2793_v11, %v2789_v60 }
0x38f1   :  { %2797 = vrot.lane.b32.xlu1 %v2795_v7, %s4144_s4  ;;  %v4013_v7 = vld [vmem:[%s4960_s20] sm:$0xff]  }
0x3963   :  { %v2798_v8 = vpop.permute.xlu1 %2797 }
0x3964   :  { %v2800_v41 = vadd.f32 %v2798_v8, %v2790_v34  ;;  %v4014_v34 = vld [vmem:[%s4960_s20 + $0x8] sm:$0xff]   ;;  %v3343_v8 = vld [vmem:[%s4957_s17] ss:$0 sm:$0xff] }
0x3966   :  { %4106 = vtanh.f32 %v2800_v41 }
0x3970   :  { %v4107_v61 = vpop.eup %4106 }
0x3971   :  { %2803 = vrot.lane.b32.xlu0 %v4107_v61, %s4143_s8  ;;  %v3349_v61 = vld [vmem:[%s4958_s18] ss:$0 sm:$0xff] }
0x39e3   :  { %v2804_v9 = vpop.permute.xlu0 %2803 }
0x39e4   :  { %v2806_v10 = vmul.f32 %v2804_v9, %v2789_v60 }
0x39e6   :  { %2808 = vrot.lane.b32.xlu1 %v2806_v10, %s4144_s4 }
0x3a58   :  { %v2809_v12 = vpop.permute.xlu1 %2808 }
0x3a59   :  { %2811 = vst.msk [vmem:[#allocation3 + $0x30] sm:$0xff] %vm156_vm1, %v2809_v12  ;;  %3809 = vmatmul.mubr.msk.f32.vlgmr.msra.gmra.mrb[28].mxu1 %vm156_vm1, %v2809_v12  ;;  %v3350_v12 = vld [vmem:[%s4959_s19] ss:$0 sm:$0xff] }
0x3a5a   :  { %3827 = vmatprep.mubr.msk.bf16.mxu1 %vm4140_vm0, %v4141_v2  ;;  %3820 = vmatpush3.bf16.msra.mxu1 %v4009_v53 }
0x3a5b   :  { %3821 = vmatprep.subr.bf16.mxu1 %v4141_v2 }
0x3a5e   :  { %3822 = vmatpush3.bf16.msra.mxu1 %v4010_v47 }
0x3a5f   :  { %3823 = vmatprep.subr.bf16.mxu1 %v4141_v2 }
0x3a62   :  { %3824 = vmatpush3.bf16.msra.mxu1 %v4011_v44 }
0x3a63   :  { %3825 = vmatprep.subr.bf16.mxu1 %v4141_v2 }
0x3a66   :  { %3826 = vmatpush3.bf16.msra.mxu1 %v4012_v0 }
0x3b2c   :  { %v2881_v14 = vpop.f32.mrb[28].mxu1 }
0x3b2d   :  { %v2885_v16 = vadd.f32 %v2881_v14, %v2099_v13  ;;  %v3810_v20 = vpop.f32.mrb[29].mxu1 }
0x3b2f   :  { %v2886_v17 = vmul.f32 %v2885_v16, %v4352_v23 }
0x3b31   :  { %4108 = vtanh.f32 %v2886_v17 }
0x3b3b   :  { %v4109_v18 = vpop.eup %4108 }
0x3b3c   :  { %v2888_v19 = vmul.f32 %v4109_v18, %v4352_v23 }
0x3b3e   :  { %v2889_v21 = vadd.f32 %v2888_v19, %v4355_v28  ;;  %v4015_v19 = vld [vmem:[%s4964_s24] sm:$0xff]  }
0x3b40   :  { %2892 = vrot.lane.b32.xlu0 %v2889_v21, %s4143_s8  ;;  %v2890_v26 = vmul.f32 %v2889_v21, %v2800_v41 }
0x3bb2   :  { %v2893_v22 = vpop.permute.xlu0 %2892 }
0x3bb3   :  { %v2895_v24 = vmul.f32 %v2893_v22, %v2889_v21 }
0x3bb5   :  { %2897 = vrot.lane.b32.xlu1 %v2895_v24, %s4144_s4  ;;  %v3355_v24 = vld [vmem:[%s4962_s22] ss:$0 sm:$0xff] }
0x3c27   :  { %v2898_v29 = vpop.permute.xlu1 %2897 }
0x3c28   :  { %v2900_v55 = vadd.f32 %v2898_v29, %v2890_v26 }
0x3c2a   :  { %4110 = vtanh.f32 %v2900_v55 }
0x3c34   :  { %v4111_v43 = vpop.eup %4110 }
0x3c35   :  { %2903 = vrot.lane.b32.xlu0 %v4111_v43, %s4143_s8 }
0x3ca7   :  { %v2904_v30 = vpop.permute.xlu0 %2903 }
0x3ca8   :  { %v2906_v31 = vmul.f32 %v2904_v30, %v2889_v21  ;;  %v3351_v21 = vld [vmem:[%s4961_s21] ss:$0 sm:$0xff] }
0x3caa   :  { %2908 = vrot.lane.b32.xlu1 %v2906_v31, %s4144_s4 }
0x3d1c   :  { %v2909_v23 = vpop.permute.xlu1 %2908 }
0x3d1d   :  { %2911 = vst.msk [vmem:[#allocation3 + $0x38] sm:$0xff] %vm156_vm1, %v2909_v23  ;;  %v2912_v28 = vsel %vm156_vm1, %v2909_v23, 0.0 }
0x3d1e   :  { %2913 = vadd.xlane.f32.xlu0 %v2912_v28 }
0x3d34   :  { %2936 = vrot.lane.b32.xlu0 %v3335_v48, %s4145_s7  ;;  %v3357_v48 = vld [vmem:[#allocation5] ss:$0 sm:$0xff] }
0x3dab   :  { %v2914_v32 = vpop.xlane.xlu0 %2913 }
0x3dac   :  { %v2916_v33 = vmul.f32 0.03125, %v2914_v32 }
0x3dae   :  { %v2917_v35 = vsub.f32 %v2906_v31, %v2916_v33 }
0x3daf   :  { %v2937_v56 = vpop.permute.xlu0 %2936 }
0x3db0   :  { %v2918_v27 = vmul.f32 %v2917_v35, %v2917_v35 }
0x3db2   :  { %2920 = vrot.lane.b32.xlu1 %v2918_v27, %s4144_s4 }
0x3e24   :  { %v2921_v37 = vpop.permute.xlu1 %2920 }
0x3e25   :  { %v2923_v38 = vsel %vm156_vm1, %v2921_v37, 0.0 }
0x3e26   :  { %2924 = vadd.xlane.f32.xlu1 %v2923_v38 }
0x3e37   :  { %2946 = vrot.lane.b32.xlu1 %v3336_v39, %s4145_s7 }
0x3eb3   :  { %v2925_v45 = vpop.xlane.xlu1 %2924 }
0x3eb4   :  { %v2926_v46 = vmul.f32 0.03125, %v2925_v45 }
0x3eb6   :  { %v2927_v49 = vadd.f32 1e-05, %v2926_v46 }
0x3eb7   :  { %v2947_v40 = vpop.permute.xlu1 %2946 }
0x3eb8   :  { %4112 = vrsqrt.f32 %v2927_v49 }
0x3ec2   :  { %v4113_v54 = vpop.eup %4112 }
0x3ec3   :  { %v2929_v57 = vmul.f32 %v4113_v54, %v2917_v35 }
0x3ec5   :  { %v2939_v62 = vmul.f32 %v2937_v56, %v2929_v57 }
0x3ec7   :  { %v2949_v1 = vadd.f32 %v2947_v40, %v2939_v62 }
0x3ec9   :  { %v2950_v36 = vpack.c.bf16 %v2949_v1, %v2949_v1 }
0x3ecb   :  { %2963 = vrot.lane.b32.xlu0 %v2950_v36, %s4144_s4 }
0x3f3d   :  { %v2964_v63 = vpop.permute.xlu0 %2963 }
0x3f3e   :  { %3816 = vmatmul.mubr.msk.bf16.vlgmr.msra.gmra.mrb[44].mxu0 %vm156_vm1, %v2964_v63 }
0x3f3f   :  { %3835 = vmatprep.mubr.msk.bf16.mxu0 %vm4140_vm0, %v4141_v2  ;;  %3832 = vmatpush3.bf16.msra.mxu0 %v4013_v7 }
0x3f40   :  { %3833 = vmatprep.subr.bf16.mxu0 %v4141_v2 }
0x3f43   :  { %3834 = vmatpush3.bf16.msra.mxu0 %v4014_v34 }
0x3f44   :  { %3839 = vmatprep.subr.bf16.mxu0 %v4141_v2 }
0x4011   :  { %v3014_v59 = vpop.f32.mrb[44].mxu0 }
0x4012   :  { %v3015_v50 = vadd.f32 %v3337_v3, %v3014_v59  ;;  %v3817_v6 = vpop.f32.mrb[45].mxu0 }
0x4013   :  { %v3017_v4 = vpop.f32.mrb[46].mxu0 }
0x4014   :  { %v3027_v52 = vmul.f32 %v3341_v51, %v3015_v50  ;;  %v3818_v5 = vpop.f32.mrb[47].mxu0 }
0x4016   :  { %v3035_v15 = vadd.f32 %v3342_v25, %v3027_v52 }
0x4018   :  { %v3036_v60 = vmax.f32 %v3035_v15, 0.0 }
0x401a   :  { %v3037_v11 = vpack.c.bf16 %v3036_v60, %v3036_v60 }
0x401c   :  { %3828 = vmatmul.mubr.msk.bf16.vlgmr.msra.gmra.mrb[32].mxu1 %vm3077_vm5, %v3037_v11 }
0x40ef   :  { %v3115_v41 = vpop.f32.mrb[32].mxu1 }
0x40f0   :  { %v3116_v9 = vadd.f32 %v3343_v8, %v3115_v41  ;;  %v3829_v10 = vpop.f32.mrb[33].mxu1 }
0x40f1   :  { %v3118_v13 = vpop.f32.mrb[34].mxu1 }
0x40f2   :  { %v3128_v14 = vmul.f32 %v3349_v61, %v3116_v9  ;;  %v3830_v16 = vpop.f32.mrb[35].mxu1 }
0x40f4   :  { %v3136_v20 = vadd.f32 %v3350_v12, %v3128_v14 }
0x40f6   :  { %v3137_v17 = vmax.f32 %v3136_v20, 0.0 }
0x40f8   :  { %v3138_v18 = vpack.c.bf16 %v3137_v17, %v3137_v17 }
0x40fa   :  { %3836 = vmatmul.mubr.msk.bf16.vlgmr.msra.gmra.mrb[48].mxu0 %vm156_vm1, %v3138_v18 }
0x40fb   :  { %3841 = vmatprep.mubr.msk.bf16.mxu0 %vm4140_vm0, %v4141_v2  ;;  %3840 = vmatpush3.bf16.msra.mxu0 %v4015_v19  ;;  %v3356_v2 = vld [vmem:[%s4963_s23] ss:$0 sm:$0xff] }
0x41cd   :  { %v3199_v22 = vpop.f32.mrb[48].mxu0 }
0x41ce   :  { %v3200_v26 = vadd.f32 %v3351_v21, %v3199_v22  ;;  %v3837_v29 = vpop.f32.mrb[49].mxu0 }
0x41cf   :  { %v3202_v55 = vpop.f32.mrb[50].mxu0 }
0x41d0   :  { %v3212_v43 = vmul.f32 %v3355_v24, %v3200_v26  ;;  %v3838_v30 = vpop.f32.mrb[51].mxu0 }
0x41d2   :  { %v3220_v31 = vadd.f32 %v3356_v2, %v3212_v43 }
0x41d4   :  { %v3221_v23 = vmax.f32 %v3220_v31, 0.0 }
0x41d6   :  { %v3222_v28 = vpack.c.bf16 %v3221_v23, %v3221_v23 }
0x41d8   :  { %3842 = vmatmul.mubr.msk.bf16.vlgmr.msra.gmra.mrb[52].mxu0 %vm3238_vm6, %v3222_v28 }
0x42ab   :  { %v3276_v32 = vpop.f32.mrb[52].mxu0 }
0x42ac   :  { %v3277_v33 = vadd.f32 %v3357_v48, %v3276_v32  ;;  %v3843_v35 = vpop.f32.mrb[53].mxu0 }
0x42ad   :  { %v3279_v27 = vpop.f32.mrb[54].mxu0 }
0x42ae   :  { %3283 = vst.msk [vmem:[%s4966_s26] sm:$0xff] %vm3282_vm7, %v3277_v33  ;;  %v3844_v37 = vpop.f32.mrb[55].mxu0 }
0x42af   :  { %3288 = vsyncpa [#allocation7], 1 }

</bundles_post_ra>
